<compile_context>
chip_gen: v7x
topology: tpu7x:2x2x1
jax: 0.10.0
libtpu: 0.0.40
codegen_flags: <defaults>
</compile_context>

<pallas_src>
import functools

import jax
import jax.numpy as jnp
from jax.experimental import pallas as pl
from jax.experimental.pallas import tpu as pltpu


def _round_up(x, m):
    return ((x + m - 1) // m) * m


def _num_tensorcores_per_chip():
    """2 TensorCores on v7x/v4/v5p-class chips, 1 on v5e/v6e.  Best effort."""
    try:
        kind = getattr(jax.devices()[0], "device_kind", "").lower()
    except Exception:  # pragma: no cover - defensive
        kind = ""
    return 2 if any(t in kind for t in ("v7", "v4", "v5p")) else 1


def _vae_kernel(act_lim, obs_dim, act_dim, hidden, latent,
                slab_ref,
                w_e1_ref, b_e1_ref,
                w_e2_ref, b_e2_ref,
                w_hd_ref, b_hd_ref,
                w_d1o_ref, w_d1z_ref, b_d1_ref,
                w_d2_ref, b_d2_ref,
                w_d3_ref, b_d3_ref,
                out_ref):
    f32 = jnp.float32
    mxu = w_e1_ref.dtype                       # bf16 matmul-operand dtype
    L = w_hd_ref.shape[1] // 2                 # 128-padded latent width

    # Input slab: (TB, S) f32, lane layout [noise(latent) | obs | act | 0-pad].
    slab = slab_ref[...]

    # ----- encoder (all slices below are at 128-lane boundaries) -----
    h = jnp.maximum(
        jnp.dot(slab.astype(mxu), w_e1_ref[...], preferred_element_type=f32)
        + b_e1_ref[...], 0.0)
    h = jnp.maximum(
        jnp.dot(h.astype(mxu), w_e2_ref[...], preferred_element_type=f32)
        + b_e2_ref[...], 0.0)

    heads = jnp.dot(h.astype(mxu), w_hd_ref[...],
                    preferred_element_type=f32) + b_hd_ref[...]
    mean = heads[:, :L]                                   # vreg-aligned slice
    log_std = jnp.clip(heads[:, L:], -4.0, 15.0)          # vreg-aligned slice
    std = jnp.exp(log_std)                                # pad cols -> exp(0)=1

    # Extract noise from the slab (columns [0:latent]) with a VPU select
    # (no lane relayout); zero the other columns so padded z columns stay 0.
    lane = jax.lax.broadcasted_iota(jnp.int32, slab.shape, 1)
    noise = jnp.where(lane < latent, slab, 0.0)[:, :L]    # aligned slice (S >= L)

    # Reparameterization in f32: z = mean + std * eps  (pad cols: 0 + 1*0 = 0).
    z = mean + std * noise

    # ----- decoder -----
    # d1_obs matmul un-fused and placed here (shrinks its live range); re-read
    # the slab from VMEM rather than holding it in vregs across the encoder.
    d1_obs = jnp.dot(slab_ref[...].astype(mxu), w_d1o_ref[...],
                     preferred_element_type=f32)
    a = jnp.maximum(
        d1_obs + jnp.dot(z.astype(mxu), w_d1z_ref[...],
                         preferred_element_type=f32) + b_d1_ref[...], 0.0)
    a = jnp.maximum(
        jnp.dot(a.astype(mxu), w_d2_ref[...], preferred_element_type=f32)
        + b_d2_ref[...], 0.0)
    u = act_lim * jnp.tanh(
        jnp.dot(a.astype(mxu), w_d3_ref[...], preferred_element_type=f32)
        + b_d3_ref[...])

    # ----- single lane-dense packed output: [ u | mean | std | 0-pad ] -----
    parts = [u[:, :act_dim], mean[:, :latent], std[:, :latent]]
    pad = out_ref.shape[-1] - (act_dim + 2 * latent)
    if pad:
        parts.append(jnp.zeros((u.shape[0], pad), f32))
    out_ref[...] = jnp.concatenate(parts, axis=-1)


def vae_forward(params, obs, act, noise, act_lim, *, weight_dtype=jnp.bfloat16):
    """VAE forward pass (u, mean, std) as one batch-tiled Pallas kernel."""
    B, obs_dim = obs.shape
    act_dim = act.shape[1]
    latent = noise.shape[1]
    hidden = params["we2"].shape[0]
    d_in = obs_dim + act_dim
    f32 = jnp.float32
    wd = weight_dtype

    # 128-lane padded widths.
    H = _round_up(hidden, 128)
    L = _round_up(latent, 128)
    A = _round_up(act_dim, 128)
    S = _round_up(latent + d_in, 128)              # input slab lanes
    OUT = _round_up(act_dim + 2 * latent, 128)     # packed output lanes

    def pad2(x, rows, cols):
        return jnp.pad(x, ((0, rows - x.shape[0]), (0, cols - x.shape[1])))

    # ---- 128-lane-aligned resident weight slabs (bf16) and biases (f32) ----
    # Input-slab row layout: [noise(latent) | obs | act | 0-pad]  -> weights get
    # zero rows wherever their input does not live.
    w_e1 = pad2(jnp.pad(params["we1"], ((latent, 0), (0, 0))), S, H).astype(wd)
    b_e1 = pad2(params["be1"], 1, H)
    w_e2 = pad2(params["we2"], H, H).astype(wd)
    b_e2 = pad2(params["be2"], 1, H)
    w_hd = jnp.concatenate([pad2(params["wm"], H, L),
                            pad2(params["wls"], H, L)], axis=1).astype(wd)
    b_hd = jnp.concatenate([pad2(params["bm"], 1, L),
                            pad2(params["bls"], 1, L)], axis=1)
    w_d1o = pad2(jnp.pad(params["wd1_obs"], ((latent, 0), (0, 0))), S, H).astype(wd)
    w_d1z = pad2(params["wd1_z"], L, H).astype(wd)
    b_d1 = pad2(params["bd1"], 1, H)
    w_d2 = pad2(params["wd2"], H, H).astype(wd)
    b_d2 = pad2(params["bd2"], 1, H)
    w_d3 = pad2(params["wd3"], H, A).astype(wd)
    b_d3 = pad2(params["bd3"], 1, A)
    weights = (w_e1, b_e1, w_e2, b_e2, w_hd, b_hd,
               w_d1o, w_d1z, b_d1, w_d2, b_d2, w_d3, b_d3)
    weight_bytes = sum(int(x.size) * x.dtype.itemsize for x in weights)

    # ---- single lane-dense f32 input slab: [noise | obs | act | 0-pad] ----
    slab = jnp.concatenate(
        [noise.astype(f32), obs.astype(f32), act.astype(f32)], axis=1)
    slab = jnp.pad(slab, ((0, 0), (0, S - slab.shape[1])))

    # ---- batch tile auto-sizing: fewest grid steps possible ----
    num_tc = _num_tensorcores_per_chip()
    vmem_ceiling = (30 << 20) if num_tc > 1 else (64 << 20)
    # Per-row VMEM: double-buffered in/out tiles + ~8 live 128-lane f32 temps.
    per_row_bytes = 4 * (2 * (S + OUT) + 8 * 128)
    tb_cap = max(8, ((vmem_ceiling - weight_bytes - (4 << 20))
                     // per_row_bytes) // 8 * 8)
    tb = min(_round_up(pl.cdiv(B, num_tc), 8), tb_cap)
    b_pad = _round_up(B, tb)
    if b_pad != B:
        slab = jnp.pad(slab, ((0, b_pad - B), (0, 0)))
    grid = (b_pad // tb,)

    # ---- VMEM budget (resident weights once, only streamed tiles ×2) ----
    vmem_budget = int(min(vmem_ceiling,
                          max(16 << 20,
                              weight_bytes + per_row_bytes * tb + (4 << 20))))

    # ---- specs ----
    in_specs = [pl.BlockSpec((tb, S), lambda i: (i, 0))] + [
        pl.BlockSpec(x.shape, lambda i: (0, 0)) for x in weights]
    out_specs = pl.BlockSpec((tb, OUT), lambda i: (i, 0))

    # ---- cost estimate (scheduler hint) ----
    flops = 2 * b_pad * (S * H + H * H + H * 2 * L + S * H + L * H
                         + H * H + H * A)
    transcendentals = b_pad * (L + A)                     # exp + tanh
    bytes_accessed = weight_bytes + 4 * b_pad * (S + OUT)
    cost = pl.CostEstimate(flops=int(flops),
                           transcendentals=int(transcendentals),
                           bytes_accessed=int(bytes_accessed))

    packed = pl.pallas_call(
        functools.partial(_vae_kernel, float(act_lim),
                          obs_dim, act_dim, hidden, latent),
        out_shape=jax.ShapeDtypeStruct((b_pad, OUT), f32),
        grid=grid,
        in_specs=in_specs,
        out_specs=out_specs,
        compiler_params=pltpu.CompilerParams(
            dimension_semantics=("parallel",),   # 2-TC chips: shard batch tiles
            vmem_limit_bytes=vmem_budget),
        cost_estimate=cost,
    )(slab, *weights)

    u = packed[:B, :act_dim]
    mean = packed[:B, act_dim:act_dim + latent]
    std = packed[:B, act_dim + latent:act_dim + 2 * latent]
    return u, mean, std


def init_params(key, obs_dim, act_dim, hidden_size, latent_dim):
    """Deterministic synthetic init (PyTorch-style uniform(-1/sqrt(fan_in), ...))."""
    def linear(k, fan_in, fan_out):
        kw, kb = jax.random.split(k)
        bound = 1.0 / jnp.sqrt(fan_in)
        w = jax.random.uniform(kw, (fan_in, fan_out), jnp.float32, -bound, bound)
        b = jax.random.uniform(kb, (1, fan_out), jnp.float32, -bound, bound)
        return w, b

    keys = jax.random.split(key, 7)
    we1, be1 = linear(keys[0], obs_dim + act_dim, hidden_size)
    we2, be2 = linear(keys[1], hidden_size, hidden_size)
    wm, bm = linear(keys[2], hidden_size, latent_dim)
    wls, bls = linear(keys[3], hidden_size, latent_dim)
    wd1, bd1 = linear(keys[4], obs_dim + latent_dim, hidden_size)
    wd2, bd2 = linear(keys[5], hidden_size, hidden_size)
    wd3, bd3 = linear(keys[6], hidden_size, act_dim)

    return {
        "we1": we1, "be1": be1,            # [obs_dim + act_dim, hidden]
        "we2": we2, "be2": be2,
        "wm": wm, "bm": bm,
        "wls": wls, "bls": bls,
        "wd1_obs": wd1[:obs_dim], "wd1_z": wd1[obs_dim:], "bd1": bd1,
        "wd2": wd2, "bd2": bd2,
        "wd3": wd3, "bd3": bd3,
    }


def vae_forward_ref(params, obs, act, noise, act_lim, weight_dtype=jnp.bfloat16):
    """Pure-JAX reference mirroring the PyTorch module semantics (bf16 MXU
    operands, f32 accumulation/elementwise — same quantization as the kernel)."""
    wd = weight_dtype

    def mm(x, w):
        return jnp.dot(x.astype(wd), w.astype(wd),
                       preferred_element_type=jnp.float32)

    obsact = jnp.concatenate([obs, act], axis=1)
    h = jnp.maximum(mm(obsact, params["we1"]) + params["be1"], 0.0)
    h = jnp.maximum(mm(h, params["we2"]) + params["be2"], 0.0)
    mean = mm(h, params["wm"]) + params["bm"]
    log_std = jnp.clip(mm(h, params["wls"]) + params["bls"], -4.0, 15.0)
    std = jnp.exp(log_std)
    z = mean + std * noise
    a = jnp.maximum(mm(obs, params["wd1_obs"]) + mm(z, params["wd1_z"])
                    + params["bd1"], 0.0)
    a = jnp.maximum(mm(a, params["wd2"]) + params["bd2"], 0.0)
    u = act_lim * jnp.tanh(mm(a, params["wd3"]) + params["bd3"])
    return u, mean, std


if __name__ == "__main__":
    # Small shapes consistent with the module's MLP structure.  The batch tile
    # is auto-sized (1 grid step on 1-TC chips, 2 parallel steps on 2-TC chips).
    B, obs_dim, act_dim, hidden_size, latent_dim = 256, 16, 8, 32, 8
    act_lim = 2.0

    key = jax.random.PRNGKey(0)
    k_params, k_obs, k_act, k_noise = jax.random.split(key, 4)

    params = init_params(k_params, obs_dim, act_dim, hidden_size, latent_dim)
    obs = jax.random.normal(k_obs, (B, obs_dim), jnp.float32)
    act = jax.random.normal(k_act, (B, act_dim), jnp.float32)
    noise = jax.random.normal(k_noise, (B, latent_dim), jnp.float32)  # randn_like(std)

    u, mean, std = jax.block_until_ready(
        vae_forward(params, obs, act, noise, act_lim))

    u_r, mean_r, std_r = vae_forward_ref(params, obs, act, noise, act_lim)

    assert u.shape == (B, act_dim)
    assert mean.shape == (B, latent_dim) and std.shape == (B, latent_dim)
    assert jnp.allclose(u, u_r, atol=1e-3, rtol=1e-3)
    assert jnp.allclose(mean, mean_r, atol=1e-3, rtol=1e-3)
    assert jnp.allclose(std, std_r, atol=1e-3, rtol=1e-3)

    # TODO(synk): decode()/decode_multiple() standalone paths are not exposed;
    # only forward() (encoder + reparameterize + decode) is implemented.
    print("KERNEL_OK")
</pallas_src>

<mosaic_0001>
module attributes {stable_mosaic.version = 11 : i64} {
  func.func @_vae_kernel(%arg0: i32, %arg1: memref<256x128xf32, #tpu.memory_space<vmem>>, %arg2: memref<128x128xbf16, #tpu.memory_space<vmem>>, %arg3: memref<1x128xf32, #tpu.memory_space<vmem>>, %arg4: memref<128x128xbf16, #tpu.memory_space<vmem>>, %arg5: memref<1x128xf32, #tpu.memory_space<vmem>>, %arg6: memref<128x256xbf16, #tpu.memory_space<vmem>>, %arg7: memref<1x256xf32, #tpu.memory_space<vmem>>, %arg8: memref<128x128xbf16, #tpu.memory_space<vmem>>, %arg9: memref<128x128xbf16, #tpu.memory_space<vmem>>, %arg10: memref<1x128xf32, #tpu.memory_space<vmem>>, %arg11: memref<128x128xbf16, #tpu.memory_space<vmem>>, %arg12: memref<1x128xf32, #tpu.memory_space<vmem>>, %arg13: memref<128x128xbf16, #tpu.memory_space<vmem>>, %arg14: memref<1x128xf32, #tpu.memory_space<vmem>>, %arg15: memref<256x128xf32, #tpu.memory_space<vmem>>) attributes {dimension_semantics = [#tpu.dimension_semantics<parallel>], iteration_bounds = array<i64: 1>, scalar_prefetch = 0 : i64, scratch_operands = 0 : i64, tpu.core_type = #tpu.core_type<tc>, window_params = [{transform_indices = @transform_0, window_bounds = array<i64: 256, 128>}, {pipeline_mode = #tpu.pipeline_mode<synchronous>, transform_indices = @transform_1, window_bounds = array<i64: 128, 128>}, {pipeline_mode = #tpu.pipeline_mode<synchronous>, transform_indices = @transform_2, window_bounds = array<i64: 1, 128>}, {pipeline_mode = #tpu.pipeline_mode<synchronous>, transform_indices = @transform_3, window_bounds = array<i64: 128, 128>}, {pipeline_mode = #tpu.pipeline_mode<synchronous>, transform_indices = @transform_4, window_bounds = array<i64: 1, 128>}, {pipeline_mode = #tpu.pipeline_mode<synchronous>, transform_indices = @transform_5, window_bounds = array<i64: 128, 256>}, {pipeline_mode = #tpu.pipeline_mode<synchronous>, transform_indices = @transform_6, window_bounds = array<i64: 1, 256>}, {pipeline_mode = #tpu.pipeline_mode<synchronous>, transform_indices = @transform_7, window_bounds = array<i64: 128, 128>}, {pipeline_mode = #tpu.pipeline_mode<synchronous>, transform_indices = @transform_8, window_bounds = array<i64: 128, 128>}, {pipeline_mode = #tpu.pipeline_mode<synchronous>, transform_indices = @transform_9, window_bounds = array<i64: 1, 128>}, {pipeline_mode = #tpu.pipeline_mode<synchronous>, transform_indices = @transform_10, window_bounds = array<i64: 128, 128>}, {pipeline_mode = #tpu.pipeline_mode<synchronous>, transform_indices = @transform_11, window_bounds = array<i64: 1, 128>}, {pipeline_mode = #tpu.pipeline_mode<synchronous>, transform_indices = @transform_12, window_bounds = array<i64: 128, 128>}, {pipeline_mode = #tpu.pipeline_mode<synchronous>, transform_indices = @transform_13, window_bounds = array<i64: 1, 128>}, {transform_indices = @transform_14, window_bounds = array<i64: 256, 128>}]} {
    %c0 = arith.constant 0 : index
    %c0_0 = arith.constant 0 : index
    %0 = vector.load %arg1[%c0, %c0_0] : memref<256x128xf32, #tpu.memory_space<vmem>>, vector<256x128xf32>
    %1 = arith.truncf %0 : vector<256x128xf32> to vector<256x128xbf16>
    %c0_1 = arith.constant 0 : index
    %c0_2 = arith.constant 0 : index
    %2 = vector.load %arg2[%c0_1, %c0_2] : memref<128x128xbf16, #tpu.memory_space<vmem>>, vector<128x128xbf16>
    %cst = arith.constant dense<0.000000e+00> : vector<256x128xf32>
    %3 = tpu.matmul %1, %2, %cst {dimension_numbers = #tpu.dot_dimension_numbers<[1], [0], [0], [1], [0, 0, 1, 1], [], []>} : vector<256x128xbf16>, vector<128x128xbf16>, vector<256x128xf32> -> vector<256x128xf32>
    %c0_3 = arith.constant 0 : index
    %c0_4 = arith.constant 0 : index
    %4 = vector.load %arg3[%c0_3, %c0_4] : memref<1x128xf32, #tpu.memory_space<vmem>>, vector<1x128xf32>
    %5 = vector.broadcast %4 : vector<1x128xf32> to vector<256x128xf32>
    %6 = arith.addf %3, %5 : vector<256x128xf32>
    %cst_5 = arith.constant 0.000000e+00 : f32
    %7 = vector.broadcast %cst_5 : f32 to vector<256x128xf32>
    %8 = arith.maximumf %6, %7 : vector<256x128xf32>
    %9 = arith.truncf %8 : vector<256x128xf32> to vector<256x128xbf16>
    %c0_6 = arith.constant 0 : index
    %c0_7 = arith.constant 0 : index
    %10 = vector.load %arg4[%c0_6, %c0_7] : memref<128x128xbf16, #tpu.memory_space<vmem>>, vector<128x128xbf16>
    %cst_8 = arith.constant dense<0.000000e+00> : vector<256x128xf32>
    %11 = tpu.matmul %9, %10, %cst_8 {dimension_numbers = #tpu.dot_dimension_numbers<[1], [0], [0], [1], [0, 0, 1, 1], [], []>} : vector<256x128xbf16>, vector<128x128xbf16>, vector<256x128xf32> -> vector<256x128xf32>
    %c0_9 = arith.constant 0 : index
    %c0_10 = arith.constant 0 : index
    %12 = vector.load %arg5[%c0_9, %c0_10] : memref<1x128xf32, #tpu.memory_space<vmem>>, vector<1x128xf32>
    %13 = vector.broadcast %12 : vector<1x128xf32> to vector<256x128xf32>
    %14 = arith.addf %11, %13 : vector<256x128xf32>
    %cst_11 = arith.constant 0.000000e+00 : f32
    %15 = vector.broadcast %cst_11 : f32 to vector<256x128xf32>
    %16 = arith.maximumf %14, %15 : vector<256x128xf32>
    %17 = arith.truncf %16 : vector<256x128xf32> to vector<256x128xbf16>
    %c0_12 = arith.constant 0 : index
    %c0_13 = arith.constant 0 : index
    %18 = vector.load %arg6[%c0_12, %c0_13] : memref<128x256xbf16, #tpu.memory_space<vmem>>, vector<128x256xbf16>
    %cst_14 = arith.constant dense<0.000000e+00> : vector<256x256xf32>
    %19 = tpu.matmul %17, %18, %cst_14 {dimension_numbers = #tpu.dot_dimension_numbers<[1], [0], [0], [1], [0, 0, 1, 1], [], []>} : vector<256x128xbf16>, vector<128x256xbf16>, vector<256x256xf32> -> vector<256x256xf32>
    %c0_15 = arith.constant 0 : index
    %c0_16 = arith.constant 0 : index
    %20 = vector.load %arg7[%c0_15, %c0_16] : memref<1x256xf32, #tpu.memory_space<vmem>>, vector<1x256xf32>
    %21 = vector.broadcast %20 : vector<1x256xf32> to vector<256x256xf32>
    %22 = arith.addf %19, %21 : vector<256x256xf32>
    %23 = vector.extract_strided_slice %22 {offsets = [0, 0], sizes = [256, 128], strides = [1, 1]} : vector<256x256xf32> to vector<256x128xf32>
    %24 = vector.extract_strided_slice %22 {offsets = [0, 128], sizes = [256, 128], strides = [1, 1]} : vector<256x256xf32> to vector<256x128xf32>
    %cst_17 = arith.constant -4.000000e+00 : f32
    %cst_18 = arith.constant 1.500000e+01 : f32
    %25 = vector.broadcast %cst_17 : f32 to vector<256x128xf32>
    %26 = arith.maximumf %25, %24 : vector<256x128xf32>
    %27 = vector.broadcast %cst_18 : f32 to vector<256x128xf32>
    %28 = arith.minimumf %27, %26 : vector<256x128xf32>
    %29 = math.exp %28 : vector<256x128xf32>
    %30 = tpu.iota {dimensions = array<i32: 1>} : vector<256x128xi32>
    %c8_i32 = arith.constant 8 : i32
    %31 = vector.broadcast %c8_i32 : i32 to vector<256x128xi32>
    %32 = arith.cmpi slt, %30, %31 : vector<256x128xi32>
    %cst_19 = arith.constant 0.000000e+00 : f32
    %33 = vector.broadcast %cst_19 : f32 to vector<256x128xf32>
    %34 = arith.select %32, %0, %33 : vector<256x128xi1>, vector<256x128xf32>
    %35 = arith.mulf %29, %34 : vector<256x128xf32>
    %36 = arith.addf %23, %35 : vector<256x128xf32>
    %c0_20 = arith.constant 0 : index
    %c0_21 = arith.constant 0 : index
    %37 = vector.load %arg1[%c0_20, %c0_21] : memref<256x128xf32, #tpu.memory_space<vmem>>, vector<256x128xf32>
    %38 = arith.truncf %37 : vector<256x128xf32> to vector<256x128xbf16>
    %c0_22 = arith.constant 0 : index
    %c0_23 = arith.constant 0 : index
    %39 = vector.load %arg8[%c0_22, %c0_23] : memref<128x128xbf16, #tpu.memory_space<vmem>>, vector<128x128xbf16>
    %cst_24 = arith.constant dense<0.000000e+00> : vector<256x128xf32>
    %40 = tpu.matmul %38, %39, %cst_24 {dimension_numbers = #tpu.dot_dimension_numbers<[1], [0], [0], [1], [0, 0, 1, 1], [], []>} : vector<256x128xbf16>, vector<128x128xbf16>, vector<256x128xf32> -> vector<256x128xf32>
    %41 = arith.truncf %36 : vector<256x128xf32> to vector<256x128xbf16>
    %c0_25 = arith.constant 0 : index
    %c0_26 = arith.constant 0 : index
    %42 = vector.load %arg9[%c0_25, %c0_26] : memref<128x128xbf16, #tpu.memory_space<vmem>>, vector<128x128xbf16>
    %cst_27 = arith.constant dense<0.000000e+00> : vector<256x128xf32>
    %43 = tpu.matmul %41, %42, %cst_27 {dimension_numbers = #tpu.dot_dimension_numbers<[1], [0], [0], [1], [0, 0, 1, 1], [], []>} : vector<256x128xbf16>, vector<128x128xbf16>, vector<256x128xf32> -> vector<256x128xf32>
    %44 = arith.addf %40, %43 : vector<256x128xf32>
    %c0_28 = arith.constant 0 : index
    %c0_29 = arith.constant 0 : index
    %45 = vector.load %arg10[%c0_28, %c0_29] : memref<1x128xf32, #tpu.memory_space<vmem>>, vector<1x128xf32>
    %46 = vector.broadcast %45 : vector<1x128xf32> to vector<256x128xf32>
    %47 = arith.addf %44, %46 : vector<256x128xf32>
    %cst_30 = arith.constant 0.000000e+00 : f32
    %48 = vector.broadcast %cst_30 : f32 to vector<256x128xf32>
    %49 = arith.maximumf %47, %48 : vector<256x128xf32>
    %50 = arith.truncf %49 : vector<256x128xf32> to vector<256x128xbf16>
    %c0_31 = arith.constant 0 : index
    %c0_32 = arith.constant 0 : index
    %51 = vector.load %arg11[%c0_31, %c0_32] : memref<128x128xbf16, #tpu.memory_space<vmem>>, vector<128x128xbf16>
    %cst_33 = arith.constant dense<0.000000e+00> : vector<256x128xf32>
    %52 = tpu.matmul %50, %51, %cst_33 {dimension_numbers = #tpu.dot_dimension_numbers<[1], [0], [0], [1], [0, 0, 1, 1], [], []>} : vector<256x128xbf16>, vector<128x128xbf16>, vector<256x128xf32> -> vector<256x128xf32>
    %c0_34 = arith.constant 0 : index
    %c0_35 = arith.constant 0 : index
    %53 = vector.load %arg12[%c0_34, %c0_35] : memref<1x128xf32, #tpu.memory_space<vmem>>, vector<1x128xf32>
    %54 = vector.broadcast %53 : vector<1x128xf32> to vector<256x128xf32>
    %55 = arith.addf %52, %54 : vector<256x128xf32>
    %cst_36 = arith.constant 0.000000e+00 : f32
    %56 = vector.broadcast %cst_36 : f32 to vector<256x128xf32>
    %57 = arith.maximumf %55, %56 : vector<256x128xf32>
    %58 = arith.truncf %57 : vector<256x128xf32> to vector<256x128xbf16>
    %c0_37 = arith.constant 0 : index
    %c0_38 = arith.constant 0 : index
    %59 = vector.load %arg13[%c0_37, %c0_38] : memref<128x128xbf16, #tpu.memory_space<vmem>>, vector<128x128xbf16>
    %cst_39 = arith.constant dense<0.000000e+00> : vector<256x128xf32>
    %60 = tpu.matmul %58, %59, %cst_39 {dimension_numbers = #tpu.dot_dimension_numbers<[1], [0], [0], [1], [0, 0, 1, 1], [], []>} : vector<256x128xbf16>, vector<128x128xbf16>, vector<256x128xf32> -> vector<256x128xf32>
    %c0_40 = arith.constant 0 : index
    %c0_41 = arith.constant 0 : index
    %61 = vector.load %arg14[%c0_40, %c0_41] : memref<1x128xf32, #tpu.memory_space<vmem>>, vector<1x128xf32>
    %62 = vector.broadcast %61 : vector<1x128xf32> to vector<256x128xf32>
    %63 = arith.addf %60, %62 : vector<256x128xf32>
    %64 = math.tanh %63 : vector<256x128xf32>
    %cst_42 = arith.constant 2.000000e+00 : f32
    %65 = vector.broadcast %cst_42 : f32 to vector<256x128xf32>
    %66 = arith.mulf %65, %64 : vector<256x128xf32>
    %67 = vector.extract_strided_slice %66 {offsets = [0, 0], sizes = [256, 8], strides = [1, 1]} : vector<256x128xf32> to vector<256x8xf32>
    %68 = vector.extract_strided_slice %23 {offsets = [0, 0], sizes = [256, 8], strides = [1, 1]} : vector<256x128xf32> to vector<256x8xf32>
    %69 = vector.extract_strided_slice %29 {offsets = [0, 0], sizes = [256, 8], strides = [1, 1]} : vector<256x128xf32> to vector<256x8xf32>
    %cst_43 = arith.constant 0.000000e+00 : f32
    %70 = vector.broadcast %cst_43 : f32 to vector<256x104xf32>
    %71 = tpu.concatenate %67, %68, %69, %70 in 1 : vector<256x8xf32>, vector<256x8xf32>, vector<256x8xf32>, vector<256x104xf32> -> vector<256x128xf32>
    %c0_44 = arith.constant 0 : index
    %c0_45 = arith.constant 0 : index
    %72 = vector.load %arg15[%c0_44, %c0_45] : memref<256x128xf32, #tpu.memory_space<vmem>>, vector<256x128xf32>
    tpu.vector_store %arg15[%c0_44, %c0_45], %71 {strides = array<i32>} : memref<256x128xf32, #tpu.memory_space<vmem>>, vector<256x128xf32>,
    return
  }
  func.func @transform_0(%arg0: i32) -> (i32, i32) {
    %c0_i32 = arith.constant 0 : i32
    %c0_i32_0 = arith.constant 0 : i32
    return %arg0, %c0_i32 : i32, i32
  }
  func.func @transform_1(%arg0: i32) -> (i32, i32) {
    %c0_i32 = arith.constant 0 : i32
    %c0_i32_0 = arith.constant 0 : i32
    %c0_i32_1 = arith.constant 0 : i32
    return %c0_i32, %c0_i32_0 : i32, i32
  }
  func.func @transform_2(%arg0: i32) -> (i32, i32) {
    %c0_i32 = arith.constant 0 : i32
    %c0_i32_0 = arith.constant 0 : i32
    %c0_i32_1 = arith.constant 0 : i32
    return %c0_i32, %c0_i32_0 : i32, i32
  }
  func.func @transform_3(%arg0: i32) -> (i32, i32) {
    %c0_i32 = arith.constant 0 : i32
    %c0_i32_0 = arith.constant 0 : i32
    %c0_i32_1 = arith.constant 0 : i32
    return %c0_i32, %c0_i32_0 : i32, i32
  }
  func.func @transform_4(%arg0: i32) -> (i32, i32) {
    %c0_i32 = arith.constant 0 : i32
    %c0_i32_0 = arith.constant 0 : i32
    %c0_i32_1 = arith.constant 0 : i32
    return %c0_i32, %c0_i32_0 : i32, i32
  }
  func.func @transform_5(%arg0: i32) -> (i32, i32) {
    %c0_i32 = arith.constant 0 : i32
    %c0_i32_0 = arith.constant 0 : i32
    %c0_i32_1 = arith.constant 0 : i32
    return %c0_i32, %c0_i32_0 : i32, i32
  }
  func.func @transform_6(%arg0: i32) -> (i32, i32) {
    %c0_i32 = arith.constant 0 : i32
    %c0_i32_0 = arith.constant 0 : i32
    %c0_i32_1 = arith.constant 0 : i32
    return %c0_i32, %c0_i32_0 : i32, i32
  }
  func.func @transform_7(%arg0: i32) -> (i32, i32) {
    %c0_i32 = arith.constant 0 : i32
    %c0_i32_0 = arith.constant 0 : i32
    %c0_i32_1 = arith.constant 0 : i32
    return %c0_i32, %c0_i32_0 : i32, i32
  }
  func.func @transform_8(%arg0: i32) -> (i32, i32) {
    %c0_i32 = arith.constant 0 : i32
    %c0_i32_0 = arith.constant 0 : i32
    %c0_i32_1 = arith.constant 0 : i32
    return %c0_i32, %c0_i32_0 : i32, i32
  }
  func.func @transform_9(%arg0: i32) -> (i32, i32) {
    %c0_i32 = arith.constant 0 : i32
    %c0_i32_0 = arith.constant 0 : i32
    %c0_i32_1 = arith.constant 0 : i32
    return %c0_i32, %c0_i32_0 : i32, i32
  }
  func.func @transform_10(%arg0: i32) -> (i32, i32) {
    %c0_i32 = arith.constant 0 : i32
    %c0_i32_0 = arith.constant 0 : i32
    %c0_i32_1 = arith.constant 0 : i32
    return %c0_i32, %c0_i32_0 : i32, i32
  }
  func.func @transform_11(%arg0: i32) -> (i32, i32) {
    %c0_i32 = arith.constant 0 : i32
    %c0_i32_0 = arith.constant 0 : i32
    %c0_i32_1 = arith.constant 0 : i32
    return %c0_i32, %c0_i32_0 : i32, i32
  }
  func.func @transform_12(%arg0: i32) -> (i32, i32) {
    %c0_i32 = arith.constant 0 : i32
    %c0_i32_0 = arith.constant 0 : i32
    %c0_i32_1 = arith.constant 0 : i32
    return %c0_i32, %c0_i32_0 : i32, i32
  }
  func.func @transform_13(%arg0: i32) -> (i32, i32) {
    %c0_i32 = arith.constant 0 : i32
    %c0_i32_0 = arith.constant 0 : i32
    %c0_i32_1 = arith.constant 0 : i32
    return %c0_i32, %c0_i32_0 : i32, i32
  }
  func.func @transform_14(%arg0: i32) -> (i32, i32) {
    %c0_i32 = arith.constant 0 : i32
    %c0_i32_0 = arith.constant 0 : i32
    return %arg0, %c0_i32 : i32, i32
  }
}

</mosaic_0001>

<bundles_post_ra>
// kernel: tpu_custom_call.1
= control target key start
LH: loop header
LB: loop body
LE: loop exit
PB: predicated region body
PF: predicated region fallthrough
CT: control target
= control target key end

     0   :  { %19 = vsyncpa [#allocation3], 0  ;;  %s4995_s0 = inlined_call_operand.hbm [shape: f32[256,128], index: 0, kind: input, shape index: {}]   ;;  %s4996_s1 = inlined_call_operand.hbm [shape: bf16[128,128], index: 1, kind: input, shape index: {}]   ;;  %s4997_s2 = inlined_call_operand.vmem [shape: f32[1,128], index: 2, kind: input, shape index: {}]   ;;  %s4998_s3 = inlined_call_operand.hbm [shape: bf16[128,128], index: 3, kind: input, shape index: {}]   ;;  %s4999_s4 = inlined_call_operand.vmem [shape: f32[1,128], index: 4, kind: input, shape index: {}]   ;;  %s5000_s5 = inlined_call_operand.hbm [shape: bf16[128,256], index: 5, kind: input, shape index: {}]   ;;  %s5001_s6 = inlined_call_operand.vmem [shape: f32[1,256], index: 6, kind: input, shape index: {}]   ;;  %s5002_s7 = inlined_call_operand.hbm [shape: bf16[128,128], index: 7, kind: input, shape index: {}]   ;;  %s5003_s8 = inlined_call_operand.hbm [shape: bf16[128,128], index: 8, kind: input, shape index: {}]   ;;  %s5004_s9 = inlined_call_operand.vmem [shape: f32[1,128], index: 9, kind: input, shape index: {}]   ;;  %s5005_s10 = inlined_call_operand.hbm [shape: bf16[128,128], index: 10, kind: input, shape index: {}]   ;;  %s5006_s11 = inlined_call_operand.vmem [shape: f32[1,128], index: 11, kind: input, shape index: {}]   ;;  %s5007_s12 = inlined_call_operand.hbm [shape: bf16[128,128], index: 12, kind: input, shape index: {}]   ;;  %s5008_s13 = inlined_call_operand.vmem [shape: f32[1,128], index: 13, kind: input, shape index: {}]   ;;  %s5009_s14 = inlined_call_operand.hbm [shape: f32[256,128], index: 14, kind: output, shape index: {}]  }
   0x1   :  { %20 = vsyncpa [#allocation6], 0 }
   0x2   :  { %21 = vsyncpa [#allocation9], 0 }
   0x3   :  { %22 = vsyncpa [#allocation12], 0 }
   0x4   :  { %23 = vsyncpa [#allocation15], 0 }
   0x5   :  { %24 = vsyncpa [#allocation4], 0  ;;  %s3805_s29 = smov [#allocation5]   ;;  %s3595_s17 = scalar_lea.hbm %s4996_s1, 1024 }
   0x6   :  { %s42_s30 = sshll.u32 %s3805_s29, 4  ;;  %p3596_p0 = scmp.ne.s32.totalorder %s4996_s1, %s3595_s17  ;;  %s43_s30 = int_to_ptr.vmem [resolvable:$true] %s42_s30 }
   0x7   :  { %p3599_p1 = scmp.lt.u32.totalorder %s3595_s17, %s4996_s1 }
   0x9   :  { %p3601_p2 = pnand %p3599_p1, %p3596_p0 }
   0xb   :  { %3604 = shalt.err (!%p3601_p2)
}
   0xc   :  { %s3605_s22 = scalar_lea.vmem %s43_s30, 1024  ;;  %p3610_p4 = scmp.lt.s32.totalorder %s43_s30, %s43_s30 }
   0xd   :  { %p3606_p3 = scmp.ne.s32.totalorder %s43_s30, %s3605_s22  ;;  %p3611_p5 = scmp.lt.s32.totalorder %s3605_s22, %s3605_s22 }
   0xf   :  { %p3612_p6 = por %p3611_p5, %p3610_p4 }
  0x11   :  { %p3613_p7 = pnand %p3612_p6, %p3606_p3 }
  0x13   :  { %3616 = shalt.err (!%p3613_p7)
}
  0x14   :  { %s3806_s23 = smov 64   ;;  %s3807_s24 = smov 4  }
  0x15   :  { %48 = dma.hbm_to_vmem [thread:$0]  %s4996_s1, 1024, %s43_s30, [#allocation6], %s3806_s23, %s3806_s23, %s3807_s24  }
  0x16   :  { %s3808_s27 = smov [#allocation8]   ;;  %s3809_s29 = smov [#allocation11]  }
  0x17   :  { %s70_s28 = sshll.u32 %s3808_s27, 4  ;;  %s96_s15 = sshll.u32 %s3809_s29, 4  ;;  %s71_s28 = int_to_ptr.vmem [resolvable:$true] %s70_s28  ;;  %s97_s15 = int_to_ptr.vmem [resolvable:$true] %s96_s15 }
  0x18   :  { %s3617_s18 = scalar_lea.hbm %s5000_s5, 2048 }
  0x19   :  { %p3618_p8 = scmp.ne.s32.totalorder %s5000_s5, %s3617_s18  ;;  %p3621_p9 = scmp.lt.u32.totalorder %s3617_s18, %s5000_s5 }
  0x1b   :  { %p3623_p10 = pnand %p3621_p9, %p3618_p8 }
  0x1d   :  { %3626 = shalt.err (!%p3623_p10)
}
  0x1e   :  { %s3627_s1 = scalar_lea.vmem %s71_s28, 2048  ;;  %p3632_p12 = scmp.lt.s32.totalorder %s71_s28, %s71_s28 }
  0x1f   :  { %p3628_p11 = scmp.ne.s32.totalorder %s71_s28, %s3627_s1  ;;  %p3633_p13 = scmp.lt.s32.totalorder %s3627_s1, %s3627_s1 }
  0x21   :  { %p3634_p0 = por %p3633_p13, %p3632_p12 }
  0x23   :  { %p3635_p1 = pnand %p3634_p0, %p3628_p11 }
  0x25   :  { %3638 = shalt.err (!%p3635_p1)
}
  0x26   :  { %s3810_s30 = smov 128   ;;  %s3811_s25 = smov 8  }
  0x27   :  { %76 = dma.hbm_to_vmem [thread:$0]  %s5000_s5, 2048, %s71_s28, [#allocation9], %s3810_s30, %s3810_s30, %s3811_s25  }
  0x28   :  { %s3639_s17 = scalar_lea.hbm %s5003_s8, 1024 }
  0x29   :  { %p3640_p2 = scmp.ne.s32.totalorder %s5003_s8, %s3639_s17  ;;  %p3643_p3 = scmp.lt.u32.totalorder %s3639_s17, %s5003_s8 }
  0x2b   :  { %p3645_p4 = pnand %p3643_p3, %p3640_p2 }
  0x2d   :  { %3648 = shalt.err (!%p3645_p4)
}
  0x2e   :  { %s3649_s22 = scalar_lea.vmem %s97_s15, 1024  ;;  %p3654_p6 = scmp.lt.s32.totalorder %s97_s15, %s97_s15 }
  0x2f   :  { %p3650_p5 = scmp.ne.s32.totalorder %s97_s15, %s3649_s22  ;;  %p3655_p7 = scmp.lt.s32.totalorder %s3649_s22, %s3649_s22 }
  0x31   :  { %p3656_p8 = por %p3655_p7, %p3654_p6 }
  0x33   :  { %p3657_p9 = pnand %p3656_p8, %p3650_p5 }
  0x35   :  { %3660 = shalt.err (!%p3657_p9)
}
  0x36   :  { %102 = dma.hbm_to_vmem [thread:$0]  %s5003_s8, 1024, %s97_s15, [#allocation12], %s3806_s23, %s3806_s23, %s3807_s24  }
  0x37   :  { %s3812_s1 = smov [#allocation2]   ;;  %s3813_s27 = smov [#allocation7]  }
  0x38   :  { %s30_s26 = sshll.u32 %s3812_s1, 4  ;;  %s56_s29 = sshll.u32 %s3813_s27, 4  ;;  %s31_s26 = int_to_ptr.vmem [resolvable:$true] %s30_s26  ;;  %s57_s29 = int_to_ptr.vmem [resolvable:$true] %s56_s29 }
  0x39   :  { %s3661_s18 = scalar_lea.hbm %s4995_s0, 4096 }
  0x3a   :  { %p3662_p10 = scmp.ne.s32.totalorder %s4995_s0, %s3661_s18  ;;  %p3665_p11 = scmp.lt.u32.totalorder %s3661_s18, %s4995_s0 }
  0x3c   :  { %p3667_p12 = pnand %p3665_p11, %p3662_p10 }
  0x3e   :  { %3670 = shalt.err (!%p3667_p12)
}
  0x3f   :  { %s3671_s8 = scalar_lea.vmem %s31_s26, 4096  ;;  %p3676_p0 = scmp.lt.s32.totalorder %s31_s26, %s31_s26 }
  0x40   :  { %p3672_p13 = scmp.ne.s32.totalorder %s31_s26, %s3671_s8  ;;  %p3677_p1 = scmp.lt.s32.totalorder %s3671_s8, %s3671_s8 }
  0x42   :  { %p3678_p2 = por %p3677_p1, %p3676_p0 }
  0x44   :  { %p3679_p3 = pnand %p3678_p2, %p3672_p13 }
  0x46   :  { %3682 = shalt.err (!%p3679_p3)
}
  0x47   :  { %36 = dma.hbm_to_vmem [thread:$0]  %s4995_s0, 4096, %s31_s26, [#allocation3], %s3810_s30, %s3810_s30, %s3811_s25  }
  0x48   :  { %s3683_s27 = scalar_lea.hbm %s4998_s3, 1024 }
  0x49   :  { %p3684_p4 = scmp.ne.s32.totalorder %s4998_s3, %s3683_s27  ;;  %p3687_p5 = scmp.lt.u32.totalorder %s3683_s27, %s4998_s3 }
  0x4b   :  { %p3689_p6 = pnand %p3687_p5, %p3684_p4 }
  0x4d   :  { %3692 = shalt.err (!%p3689_p6)
}
  0x4e   :  { %s3693_s20 = scalar_lea.vmem %s57_s29, 1024  ;;  %p3698_p8 = scmp.lt.s32.totalorder %s57_s29, %s57_s29 }
  0x4f   :  { %p3694_p7 = scmp.ne.s32.totalorder %s57_s29, %s3693_s20  ;;  %p3699_p9 = scmp.lt.s32.totalorder %s3693_s20, %s3693_s20 }
  0x51   :  { %p3700_p10 = por %p3699_p9, %p3698_p8 }
  0x53   :  { %p3701_p11 = pnand %p3700_p10, %p3694_p7 }
  0x55   :  { %3704 = shalt.err (!%p3701_p11)
}
  0x56   :  { %62 = dma.hbm_to_vmem [thread:$0]  %s4998_s3, 1024, %s57_s29, [#allocation6], %s3806_s23, %s3806_s23, %s3807_s24  }
  0x57   :  { %s3814_s21 = smov [#allocation10]   ;;  %s3815_s8 = smov [#allocation13]  }
  0x58   :  { %s84_s22 = sshll.u32 %s3814_s21, 4  ;;  %s110_s15 = sshll.u32 %s3815_s8, 4  ;;  %s85_s22 = int_to_ptr.vmem [resolvable:$true] %s84_s22  ;;  %s111_s15 = int_to_ptr.vmem [resolvable:$true] %s110_s15 }
  0x59   :  { %s3705_s1 = scalar_lea.hbm %s5002_s7, 1024 }
  0x5a   :  { %p3706_p12 = scmp.ne.s32.totalorder %s5002_s7, %s3705_s1  ;;  %p3709_p13 = scmp.lt.u32.totalorder %s3705_s1, %s5002_s7 }
  0x5c   :  { %p3711_p0 = pnand %p3709_p13, %p3706_p12 }
  0x5e   :  { %3714 = shalt.err (!%p3711_p0)
}
  0x5f   :  { %s3715_s3 = scalar_lea.vmem %s85_s22, 1024  ;;  %p3720_p2 = scmp.lt.s32.totalorder %s85_s22, %s85_s22 }
  0x60   :  { %p3716_p1 = scmp.ne.s32.totalorder %s85_s22, %s3715_s3  ;;  %p3721_p3 = scmp.lt.s32.totalorder %s3715_s3, %s3715_s3 }
  0x62   :  { %p3722_p4 = por %p3721_p3, %p3720_p2 }
  0x64   :  { %p3723_p5 = pnand %p3722_p4, %p3716_p1 }
  0x66   :  { %3726 = shalt.err (!%p3723_p5)
}
  0x67   :  { %90 = dma.hbm_to_vmem [thread:$0]  %s5002_s7, 1024, %s85_s22, [#allocation9], %s3806_s23, %s3806_s23, %s3807_s24  }
  0x68   :  { %s3727_s26 = scalar_lea.hbm %s5005_s10, 1024 }
  0x69   :  { %p3728_p6 = scmp.ne.s32.totalorder %s5005_s10, %s3727_s26  ;;  %p3731_p7 = scmp.lt.u32.totalorder %s3727_s26, %s5005_s10 }
  0x6b   :  { %p3733_p8 = pnand %p3731_p7, %p3728_p6 }
  0x6d   :  { %3736 = shalt.err (!%p3733_p8)
}
  0x6e   :  { %s3737_s1 = scalar_lea.vmem %s111_s15, 1024  ;;  %p3742_p10 = scmp.lt.s32.totalorder %s111_s15, %s111_s15 }
  0x6f   :  { %p3738_p9 = scmp.ne.s32.totalorder %s111_s15, %s3737_s1  ;;  %p3743_p11 = scmp.lt.s32.totalorder %s3737_s1, %s3737_s1 }
  0x71   :  { %p3744_p12 = por %p3743_p11, %p3742_p10 }
  0x73   :  { %p3745_p13 = pnand %p3744_p12, %p3738_p9 }
  0x75   :  { %3748 = shalt.err (!%p3745_p13)
}
  0x76   :  { %116 = dma.hbm_to_vmem [thread:$0]  %s5005_s10, 1024, %s111_s15, [#allocation12], %s3806_s23, %s3806_s23, %s3807_s24  }
  0x77   :  { %s3816_s27 = smov [#allocation14]   ;;  %s3749_s3 = scalar_lea.hbm %s5007_s12, 1024 }
  0x78   :  { %s124_s16 = sshll.u32 %s3816_s27, 4  ;;  %p3750_p0 = scmp.ne.s32.totalorder %s5007_s12, %s3749_s3  ;;  %s125_s16 = int_to_ptr.vmem [resolvable:$true] %s124_s16 }
  0x79   :  { %p3753_p1 = scmp.lt.u32.totalorder %s3749_s3, %s5007_s12 }
  0x7b   :  { %p3755_p2 = pnand %p3753_p1, %p3750_p0 }
  0x7d   :  { %3758 = shalt.err (!%p3755_p2)
}
  0x7e   :  { %s3759_s26 = scalar_lea.vmem %s125_s16, 1024  ;;  %p3764_p4 = scmp.lt.s32.totalorder %s125_s16, %s125_s16 }
  0x7f   :  { %p3760_p3 = scmp.ne.s32.totalorder %s125_s16, %s3759_s26  ;;  %p3765_p5 = scmp.lt.s32.totalorder %s3759_s26, %s3759_s26 }
  0x81   :  { %p3766_p6 = por %p3765_p5, %p3764_p4 }
  0x83   :  { %p3767_p7 = pnand %p3766_p6, %p3760_p3 }
  0x85   :  { %3770 = shalt.err (!%p3767_p7)
}
  0x86   :  { %130 = dma.hbm_to_vmem [thread:$0]  %s5007_s12, 1024, %s125_s16, [#allocation15], %s3806_s23, %s3806_s23, %s3807_s24  }
  0x87   :  { %3793 = dma.done.wait [#allocation3], 4096  }
  0x88   :  { %3794 = vsyncadd [#allocation3], 4294963200 }
  0x89   :  { %3795 = dma.done.wait [#allocation6], 2048  }
  0x8a   :  { %3796 = vsyncadd [#allocation6], 4294965248 }
  0x8b   :  { %3797 = dma.done.wait [#allocation9], 3072  }
  0x8c   :  { %3798 = vsyncadd [#allocation9], 4294964224 }
  0x8d   :  { %3799 = dma.done.wait [#allocation12], 2048  }
  0x8e   :  { %3800 = vsyncadd [#allocation12], 4294965248 }
  0x8f   :  { %3801 = dma.done.wait [#allocation15], 1024  }
  0x90   :  { %3802 = vsyncadd [#allocation15], 4294966272  ;;  %v3379_v0 = vld [vmem:[#allocation5] sm:$0xff]   ;;  %v3380_v1 = vld [vmem:[#allocation5 + $0x8] sm:$0xff]   ;;  %v784_v6 = vlaneseq  ;;  %vm2679_vm1 = vcmask 64512   ;;  %vm2712_vm2 = vcmask 130048  }
  0x91   :  { %3044 = vmatprep.subr.bf16.mxu0 %v3379_v0  ;;  %v3381_v2 = vld [vmem:[#allocation5 + $0x10] sm:$0xff]   ;;  %v3382_v3 = vld [vmem:[#allocation5 + $0x18] sm:$0xff]   ;;  %v158_v4 = vld [vmem:[#allocation2] sm:$0xff]  ;;  %vm2745_vm3 = vcmask 195584  }
  0x92   :  { %3045 = vmatpush3.bf16.msra.mxu0 %v3379_v0  ;;  %v159_v5 = vld [vmem:[#allocation2 + $0x8] sm:$0xff]  ;;  %v4018_v8 = vand.u32 127, %v784_v6  ;;  %v3383_v9 = vld [vmem:[#allocation5 + $0x20] sm:$0xff]   ;;  %v4026_v13 = vld [vmem:[#allocation2 + $0x90] sm:$0xff] }
  0x93   :  { %3046 = vmatprep.subr.bf16.mxu0 %v3380_v1  ;;  %v4015_v7 = vpack.c.bf16 %v159_v5, %v158_v4  ;;  %v4021_v10 = vld [vmem:[#allocation2 + $0x80] sm:$0xff]  ;;  %v4023_v11 = vld [vmem:[#allocation2 + $0x88] sm:$0xff]  ;;  %v4028_v14 = vld [vmem:[#allocation2 + $0x98] sm:$0xff] }
  0x94   :  { %v3384_v12 = vld [vmem:[#allocation5 + $0x28] sm:$0xff]   ;;  %vm1197_vm0 = vcmp.lt.s32.totalorder %v4018_v8, 8  ;;  %v4030_v15 = vld [vmem:[#allocation2 + $0xa0] sm:$0xff]  ;;  %v4044_v19 = vld [vmem:[#allocation2 + $0xb0] sm:$0xff] }
  0x95   :  { %3060 = vmatprep.mubr.bf16.mxu0 %v4015_v7  ;;  %v4035_v16 = vsel %vm1197_vm0, %v4021_v10, 0.0  ;;  %v4040_v17 = vsel %vm1197_vm0, %v4023_v11, 0.0  ;;  %v4042_v18 = vld [vmem:[#allocation2 + $0xa8] sm:$0xff]  ;;  %v4046_v20 = vld [vmem:[#allocation2 + $0xb8] sm:$0xff]  ;;  %v4051_v21 = vsel %vm1197_vm0, %v4026_v13, 0.0  ;;  %v4056_v22 = vsel %vm1197_vm0, %v4028_v14, 0.0 }
  0x96   :  { %3047 = vmatpush3.bf16.msra.mxu0 %v3380_v1  ;;  %v4061_v23 = vsel %vm1197_vm0, %v4030_v15, 0.0  ;;  %v4063_v24 = vld [vmem:[#allocation2 + $0xc0] sm:$0xff]  ;;  %v4065_v25 = vld [vmem:[#allocation2 + $0xc8] sm:$0xff]  ;;  %v4067_v26 = vld [vmem:[#allocation2 + $0xd0] sm:$0xff]  ;;  %v4072_v27 = vsel %vm1197_vm0, %v4042_v18, 0.0  ;;  %v4077_v28 = vsel %vm1197_vm0, %v4044_v19, 0.0 }
  0x97   :  { %3048 = vmatprep.subr.bf16.mxu0 %v3381_v2  ;;  %v4082_v29 = vsel %vm1197_vm0, %v4046_v20, 0.0  ;;  %v4084_v30 = vld [vmem:[#allocation2 + $0xd8] sm:$0xff]  ;;  %v4086_v31 = vld [vmem:[#allocation2 + $0xe0] sm:$0xff]  ;;  %v4088_v32 = vld [vmem:[#allocation2 + $0xe8] sm:$0xff]  ;;  %v4093_v34 = vsel %vm1197_vm0, %v4063_v24, 0.0  ;;  %v4098_v35 = vsel %vm1197_vm0, %v4065_v25, 0.0 }
  0x98   :  { %v3385_v33 = vld [vmem:[#allocation5 + $0x30] sm:$0xff]   ;;  %v4102_v37 = vld [vmem:[#allocation2 + $0xf8] sm:$0xff]  ;;  %v4107_v38 = vsel %vm1197_vm0, %v4067_v26, 0.0  ;;  %v4112_v39 = vsel %vm1197_vm0, %v4084_v30, 0.0  ;;  %v4117_v40 = vsel %vm1197_vm0, %v4086_v31, 0.0  ;;  %v3387_v41 = vld [vmem:[#allocation7] sm:$0xff]  }
  0x99   :  { %v4100_v36 = vld [vmem:[#allocation2 + $0xf0] sm:$0xff]  ;;  %v4122_v42 = vsel %vm1197_vm0, %v4088_v32, 0.0  ;;  %v4132_v44 = vsel %vm1197_vm0, %v4102_v37, 0.0  ;;  %v3388_v45 = vld [vmem:[#allocation7 + $0x8] sm:$0xff]   ;;  %3092 = vmatprep.subr.bf16.mxu1 %v3387_v41  ;;  %v3386_v47 = vld [vmem:[#allocation5 + $0x38] sm:$0xff]  }
  0x9a   :  { %3049 = vmatpush3.bf16.msra.mxu0 %v3381_v2  ;;  %v4127_v43 = vsel %vm1197_vm0, %v4100_v36, 0.0  ;;  %3093 = vmatpush3.bf16.msra.mxu1 %v3387_v41  ;;  %v3389_v46 = vld [vmem:[#allocation7 + $0x10] sm:$0xff]   ;;  %v161_v49 = vld [vmem:[#allocation2 + $0x18] sm:$0xff]  ;;  %v162_v51 = vld [vmem:[#allocation2 + $0x20] sm:$0xff]  ;;  %v4162_v41 = vpack.c.bf16 %v4028_v14, %v4026_v13  ;;  %v4182_v13 = vpack.c.bf16 %v4084_v30, %v4067_v26  ;;  %v4186_v14 = vpack.c.bf16 %v4088_v32, %v4086_v31 }
  0x9b   :  { %3050 = vmatprep.subr.bf16.mxu0 %v3382_v3  ;;  %3094 = vmatprep.subr.bf16.mxu1 %v3388_v45  ;;  %v160_v48 = vld [vmem:[#allocation2 + $0x10] sm:$0xff]  ;;  %v3390_v50 = vld [vmem:[#allocation7 + $0x18] sm:$0xff]   ;;  %v163_v52 = vld [vmem:[#allocation2 + $0x28] sm:$0xff] }
  0x9c   :  { %v3391_v53 = vld [vmem:[#allocation7 + $0x20] sm:$0xff]   ;;  %v4134_v54 = vpack.c.bf16 %v161_v49, %v160_v48  ;;  %v4136_v55 = vpack.c.bf16 %v163_v52, %v162_v51  ;;  %v164_v56 = vld [vmem:[#allocation2 + $0x30] sm:$0xff]  ;;  %v165_v57 = vld [vmem:[#allocation2 + $0x38] sm:$0xff] }
  0x9d   :  { %v3392_v58 = vld [vmem:[#allocation7 + $0x28] sm:$0xff]   ;;  %v166_v59 = vld [vmem:[#allocation2 + $0x40] sm:$0xff]  ;;  %v4140_v61 = vpack.c.bf16 %v165_v57, %v164_v56  ;;  %v168_v63 = vld [vmem:[#allocation2 + $0x50] sm:$0xff] }
  0x9e   :  { %3051 = vmatpush3.bf16.msra.mxu0 %v3382_v3  ;;  %3095 = vmatpush3.bf16.msra.mxu1 %v3388_v45  ;;  %v167_v60 = vld [vmem:[#allocation2 + $0x48] sm:$0xff]  ;;  %v169_v0 = vld [vmem:[#allocation2 + $0x58] sm:$0xff]  ;;  %v170_v1 = vld [vmem:[#allocation2 + $0x60] sm:$0xff]  ;;  %v4166_v45 = vpack.c.bf16 %v4042_v18, %v4030_v15  ;;  %v4192_v15 = vpack.c.bf16 %v4102_v37, %v4100_v36 }
  0x9f   :  { %3052 = vmatprep.subr.bf16.mxu0 %v3383_v9  ;;  %3096 = vmatprep.subr.bf16.mxu1 %v3389_v46  ;;  %v4142_v62 = vpack.c.bf16 %v167_v60, %v166_v59  ;;  %v171_v2 = vld [vmem:[#allocation2 + $0x68] sm:$0xff]  ;;  %v4146_v3 = vpack.c.bf16 %v169_v0, %v168_v63  ;;  %v172_v5 = vld [vmem:[#allocation2 + $0x70] sm:$0xff]  ;;  %v4198_v51 = vld [vmem:[%s4997_s2] ss:$0 sm:$0xff] }
  0xa0   :  { %v4148_v4 = vpack.c.bf16 %v171_v2, %v170_v1  ;;  %v3393_v18 = vld [vmem:[#allocation7 + $0x30] sm:$0xff]   ;;  %v3403_v30 = vld [vmem:[#allocation8 + $0x24] ss:$8 sps:$4 sm:$0xff]   ;;  %v3401_v31 = vld [vmem:[#allocation8 + $0x20] ss:$8 sps:$4 sm:$0xff]  }
  0xa1   :  { %v3398_v26 = vld [vmem:[#allocation8 + $0x10] ss:$8 sps:$4 sm:$0xff]   ;;  %v3406_v32 = vld [vmem:[#allocation8 + $0x34] ss:$8 sps:$4 sm:$0xff]   ;;  %v3409_v37 = vld [vmem:[#allocation8 + $0x44] ss:$8 sps:$4 sm:$0xff]  }
  0xa2   :  { %3053 = vmatpush3.bf16.msra.mxu0 %v3383_v9  ;;  %3097 = vmatpush3.bf16.msra.mxu1 %v3389_v46  ;;  %v173_v9 = vld [vmem:[#allocation2 + $0x78] sm:$0xff]  ;;  %v3407_v46 = vld [vmem:[#allocation8 + $0x40] ss:$8 sps:$4 sm:$0xff]   ;;  %v3415_v49 = vld [vmem:[#allocation8 + $0x64] ss:$8 sps:$4 sm:$0xff]  }
  0xa3   :  { %3054 = vmatprep.subr.bf16.mxu0 %v3384_v12  ;;  %3098 = vmatprep.subr.bf16.mxu1 %v3390_v50  ;;  %v3404_v36 = vld [vmem:[#allocation8 + $0x30] ss:$8 sps:$4 sm:$0xff]  }
  0xa4   :  { %v3410_v48 = vld [vmem:[#allocation8 + $0x50] ss:$8 sps:$4 sm:$0xff]  }
  0xa6   :  { %3055 = vmatpush3.bf16.msra.mxu0 %v3384_v12  ;;  %3099 = vmatpush3.bf16.msra.mxu1 %v3390_v50  ;;  %v4152_v12 = vpack.c.bf16 %v173_v9, %v172_v5  ;;  %v3413_v50 = vld [vmem:[#allocation8 + $0x60] ss:$8 sps:$4 sm:$0xff]  }
  0xa7   :  { %3056 = vmatprep.subr.bf16.mxu0 %v3385_v33  ;;  %3100 = vmatprep.subr.bf16.mxu1 %v3391_v53 }
  0xaa   :  { %3057 = vmatpush3.bf16.msra.mxu0 %v3385_v33  ;;  %3101 = vmatpush3.bf16.msra.mxu1 %v3391_v53  ;;  %v4156_v33 = vpack.c.bf16 %v4023_v11, %v4021_v10  ;;  %v4172_v10 = vpack.c.bf16 %v4046_v20, %v4044_v19  ;;  %v4176_v11 = vpack.c.bf16 %v4065_v25, %v4063_v24  ;;  %v3394_v19 = vld [vmem:[#allocation7 + $0x38] sm:$0xff]   ;;  %v3395_v20 = vld [vmem:[#allocation8] ss:$8 sps:$4 sm:$0xff]   ;;  %v3397_v24 = vld [vmem:[#allocation8 + $0x4] ss:$8 sps:$4 sm:$0xff]  }
  0xab   :  { %3058 = vmatprep.subr.bf16.mxu0 %v3386_v47  ;;  %3102 = vmatprep.subr.bf16.mxu1 %v3392_v58  ;;  %v3400_v25 = vld [vmem:[#allocation8 + $0x14] ss:$8 sps:$4 sm:$0xff]  }
  0xae   :  { %3059 = vmatpush3.bf16.msra.mxu0 %v3386_v47  ;;  %3103 = vmatpush3.bf16.msra.mxu1 %v3392_v58  ;;  %v3412_v47 = vld [vmem:[#allocation8 + $0x54] ss:$8 sps:$4 sm:$0xff]  }
  0xaf   :  { %3104 = vmatprep.subr.bf16.mxu1 %v3393_v18  ;;  %874 = vmatprep.subr.bf16.mxu0 %v3397_v24 }
  0xb1   :  { %3061 = vmatmul.mubr.bf16.vlgmr.msra.gmra.mrb[0].mxu0 %v4134_v54 }
  0xb2   :  { %3064 = vmatprep.mubr.bf16.mxu0 %v4136_v55  ;;  %3105 = vmatpush3.bf16.msra.mxu1 %v3393_v18 }
  0xb3   :  { %3106 = vmatprep.subr.bf16.mxu1 %v3394_v19  ;;  %875 = vmatpush1.bf16.msra.mxu0 %v3395_v20 }
  0xb4   :  { %876 = vmatprep.subr.bf16.mxu0 %v3400_v25 }
  0xb6   :  { %3107 = vmatpush3.bf16.msra.mxu1 %v3394_v19 }
  0xb7   :  { %877 = vmatpush1.bf16.msra.mxu0 %v3398_v26 }
  0xb8   :  { %878 = vmatprep.subr.bf16.mxu0 %v3403_v30 }
  0xb9   :  { %3065 = vmatmul.mubr.bf16.gmra.mrb[4].mxu0 %v4140_v61 }
  0xba   :  { %3068 = vmatprep.mubr.bf16.mxu0 %v4142_v62 }
  0xbb   :  { %879 = vmatpush1.bf16.msra.mxu0 %v3401_v31 }
  0xbc   :  { %880 = vmatprep.subr.bf16.mxu0 %v3406_v32 }
  0xbf   :  { %881 = vmatpush1.bf16.msra.mxu0 %v3404_v36 }
  0xc0   :  { %882 = vmatprep.subr.bf16.mxu0 %v3409_v37 }
  0xc1   :  { %3069 = vmatmul.mubr.bf16.gmra.mrb[8].mxu0 %v4146_v3 }
  0xc2   :  { %3072 = vmatprep.mubr.bf16.mxu0 %v4148_v4 }
  0xc3   :  { %883 = vmatpush1.bf16.msra.mxu0 %v3407_v46 }
  0xc4   :  { %884 = vmatprep.subr.bf16.mxu0 %v3412_v47 }
  0xc7   :  { %885 = vmatpush1.bf16.msra.mxu0 %v3410_v48 }
  0xc8   :  { %886 = vmatprep.subr.bf16.mxu0 %v3415_v49 }
  0xc9   :  { %3073 = vmatmul.mubr.bf16.gmra.mrb[12].mxu0 %v4152_v12 }
  0xca   :  { %3076 = vmatprep.mubr.bf16.mxu0 %v4156_v33 }
  0xcb   :  { %887 = vmatpush1.bf16.msra.mxu0 %v3413_v50 }
  0xd1   :  { %3077 = vmatmul.mubr.bf16.gmra.mrb[16].mxu0 %v4162_v41 }
  0xd2   :  { %3080 = vmatprep.mubr.bf16.mxu0 %v4166_v45 }
  0xd9   :  { %3081 = vmatmul.mubr.bf16.gmra.mrb[20].mxu0 %v4172_v10 }
  0xda   :  { %3084 = vmatprep.mubr.bf16.mxu0 %v4176_v11 }
  0xe1   :  { %3085 = vmatmul.mubr.bf16.gmra.mrb[24].mxu0 %v4182_v13 }
  0xe2   :  { %3088 = vmatprep.mubr.bf16.mxu0 %v4186_v14 }
  0xe9   :  { %3089 = vmatmul.mubr.bf16.gmra.mrb[28].mxu0 %v4192_v15 }
 0x184   :  { %v3062_v52 = vpop.f32.mrb[0].mxu0 }
 0x185   :  { %v320_v53 = vadd.f32 %v3062_v52, %v4198_v51  ;;  %v311_v56 = vpop.f32.mrb[1].mxu0 }
 0x186   :  { %v312_v57 = vadd.f32 %v4198_v51, %v311_v56  ;;  %v3063_v58 = vpop.f32.mrb[2].mxu0 }
 0x187   :  { %v323_v59 = vadd.f32 %v3063_v58, %v4198_v51  ;;  %v314_v60 = vpop.f32.mrb[3].mxu0  ;;  %v440_v0 = vmax.f32 %v320_v53, 0.0 }
 0x188   :  { %v315_v63 = vadd.f32 %v4198_v51, %v314_v60  ;;  %v438_v2 = vmax.f32 %v312_v57, 0.0 }
 0x189   :  { %v441_v1 = vmax.f32 %v323_v59, 0.0 }
 0x18a   :  { %v439_v5 = vmax.f32 %v315_v63, 0.0 }
 0x18b   :  { %v471_v9 = vpack.c.bf16 %v441_v1, %v440_v0 }
 0x18c   :  { %v3066_v18 = vpop.f32.mrb[4].mxu0  ;;  %v470_v19 = vpack.c.bf16 %v439_v5, %v438_v2 }
 0x18d   :  { %v336_v20 = vadd.f32 %v3066_v18, %v4198_v51  ;;  %v327_v24 = vpop.f32.mrb[5].mxu0 }
 0x18e   :  { %v328_v25 = vadd.f32 %v4198_v51, %v327_v24  ;;  %3108 = vmatprep.mubr.bf16.mxu1 %v470_v19  ;;  %v3067_v26 = vpop.f32.mrb[6].mxu0 }
 0x18f   :  { %v444_v30 = vmax.f32 %v336_v20, 0.0  ;;  %v339_v31 = vadd.f32 %v3067_v26, %v4198_v51  ;;  %3109 = vmatmul.mubr.bf16.vlgmr.msra.gmra.mrb[0].mxu1 %v471_v9  ;;  %v330_v32 = vpop.f32.mrb[7].mxu0 }
 0x190   :  { %v442_v36 = vmax.f32 %v328_v25, 0.0  ;;  %v331_v37 = vadd.f32 %v4198_v51, %v330_v32 }
 0x191   :  { %v445_v46 = vmax.f32 %v339_v31, 0.0 }
 0x192   :  { %v443_v47 = vmax.f32 %v331_v37, 0.0 }
 0x193   :  { %v473_v48 = vpack.c.bf16 %v445_v46, %v444_v30 }
 0x194   :  { %v472_v49 = vpack.c.bf16 %v443_v47, %v442_v36  ;;  %v3070_v50 = vpop.f32.mrb[8].mxu0 }
 0x195   :  { %v352_v52 = vadd.f32 %v3070_v50, %v4198_v51  ;;  %v343_v53 = vpop.f32.mrb[9].mxu0 }
 0x196   :  { %3112 = vmatprep.mubr.bf16.mxu1 %v472_v49  ;;  %v344_v56 = vadd.f32 %v4198_v51, %v343_v53  ;;  %v3071_v57 = vpop.f32.mrb[10].mxu0 }
 0x197   :  { %3113 = vmatmul.mubr.bf16.gmra.mrb[4].mxu1 %v473_v48  ;;  %v448_v58 = vmax.f32 %v352_v52, 0.0  ;;  %v355_v59 = vadd.f32 %v3071_v57, %v4198_v51  ;;  %v346_v60 = vpop.f32.mrb[11].mxu0 }
 0x198   :  { %v446_v63 = vmax.f32 %v344_v56, 0.0  ;;  %v347_v0 = vadd.f32 %v4198_v51, %v346_v60 }
 0x199   :  { %v449_v1 = vmax.f32 %v355_v59, 0.0 }
 0x19a   :  { %v447_v2 = vmax.f32 %v347_v0, 0.0 }
 0x19b   :  { %v475_v5 = vpack.c.bf16 %v449_v1, %v448_v58 }
 0x19c   :  { %v474_v9 = vpack.c.bf16 %v447_v2, %v446_v63  ;;  %v3074_v18 = vpop.f32.mrb[12].mxu0 }
 0x19d   :  { %v368_v19 = vadd.f32 %v3074_v18, %v4198_v51  ;;  %v359_v20 = vpop.f32.mrb[13].mxu0 }
 0x19e   :  { %3116 = vmatprep.mubr.bf16.mxu1 %v474_v9  ;;  %v360_v24 = vadd.f32 %v4198_v51, %v359_v20  ;;  %v3075_v25 = vpop.f32.mrb[14].mxu0 }
 0x19f   :  { %3117 = vmatmul.mubr.bf16.gmra.mrb[8].mxu1 %v475_v5  ;;  %v452_v26 = vmax.f32 %v368_v19, 0.0  ;;  %v371_v30 = vadd.f32 %v3075_v25, %v4198_v51  ;;  %v362_v31 = vpop.f32.mrb[15].mxu0 }
 0x1a0   :  { %v450_v32 = vmax.f32 %v360_v24, 0.0  ;;  %v363_v36 = vadd.f32 %v4198_v51, %v362_v31 }
 0x1a1   :  { %v453_v37 = vmax.f32 %v371_v30, 0.0 }
 0x1a2   :  { %v451_v46 = vmax.f32 %v363_v36, 0.0 }
 0x1a3   :  { %v477_v47 = vpack.c.bf16 %v453_v37, %v452_v26 }
 0x1a4   :  { %v476_v48 = vpack.c.bf16 %v451_v46, %v450_v32  ;;  %v3078_v49 = vpop.f32.mrb[16].mxu0 }
 0x1a5   :  { %v384_v50 = vadd.f32 %v3078_v49, %v4198_v51  ;;  %v375_v52 = vpop.f32.mrb[17].mxu0 }
 0x1a6   :  { %3120 = vmatprep.mubr.bf16.mxu1 %v476_v48  ;;  %v376_v53 = vadd.f32 %v4198_v51, %v375_v52  ;;  %v3079_v56 = vpop.f32.mrb[18].mxu0 }
 0x1a7   :  { %3121 = vmatmul.mubr.bf16.gmra.mrb[12].mxu1 %v477_v47  ;;  %v456_v57 = vmax.f32 %v384_v50, 0.0  ;;  %v387_v58 = vadd.f32 %v3079_v56, %v4198_v51  ;;  %v378_v59 = vpop.f32.mrb[19].mxu0 }
 0x1a8   :  { %v454_v60 = vmax.f32 %v376_v53, 0.0  ;;  %v379_v63 = vadd.f32 %v4198_v51, %v378_v59 }
 0x1a9   :  { %v457_v0 = vmax.f32 %v387_v58, 0.0 }
 0x1aa   :  { %v455_v1 = vmax.f32 %v379_v63, 0.0 }
 0x1ab   :  { %v479_v2 = vpack.c.bf16 %v457_v0, %v456_v57 }
 0x1ac   :  { %v478_v5 = vpack.c.bf16 %v455_v1, %v454_v60  ;;  %v3082_v9 = vpop.f32.mrb[20].mxu0 }
 0x1ad   :  { %v400_v18 = vadd.f32 %v3082_v9, %v4198_v51  ;;  %v391_v19 = vpop.f32.mrb[21].mxu0 }
 0x1ae   :  { %3124 = vmatprep.mubr.bf16.mxu1 %v478_v5  ;;  %v392_v20 = vadd.f32 %v4198_v51, %v391_v19  ;;  %v3083_v24 = vpop.f32.mrb[22].mxu0 }
 0x1af   :  { %3125 = vmatmul.mubr.bf16.gmra.mrb[16].mxu1 %v479_v2  ;;  %v460_v25 = vmax.f32 %v400_v18, 0.0  ;;  %v403_v26 = vadd.f32 %v3083_v24, %v4198_v51  ;;  %v394_v30 = vpop.f32.mrb[23].mxu0 }
 0x1b0   :  { %v458_v31 = vmax.f32 %v392_v20, 0.0  ;;  %v395_v32 = vadd.f32 %v4198_v51, %v394_v30 }
 0x1b1   :  { %v461_v36 = vmax.f32 %v403_v26, 0.0 }
 0x1b2   :  { %v459_v37 = vmax.f32 %v395_v32, 0.0 }
 0x1b3   :  { %v481_v46 = vpack.c.bf16 %v461_v36, %v460_v25 }
 0x1b4   :  { %v480_v47 = vpack.c.bf16 %v459_v37, %v458_v31  ;;  %v3086_v48 = vpop.f32.mrb[24].mxu0 }
 0x1b5   :  { %v416_v49 = vadd.f32 %v3086_v48, %v4198_v51  ;;  %v407_v50 = vpop.f32.mrb[25].mxu0  ;;  %v3418_v48 = vld [vmem:[#allocation8 + $0x74] ss:$8 sps:$4 sm:$0xff]  }
 0x1b6   :  { %3128 = vmatprep.mubr.bf16.mxu1 %v480_v47  ;;  %v408_v52 = vadd.f32 %v4198_v51, %v407_v50  ;;  %v3087_v53 = vpop.f32.mrb[26].mxu0  ;;  %v3416_v47 = vld [vmem:[#allocation8 + $0x70] ss:$8 sps:$4 sm:$0xff]   ;;  %888 = vmatprep.subr.bf16.mxu0 %v3418_v48  ;;  %v4236_v50 = vld [vmem:[%s4999_s4] ss:$0 sm:$0xff] }
 0x1b7   :  { %3129 = vmatmul.mubr.bf16.gmra.mrb[20].mxu1 %v481_v46  ;;  %v464_v56 = vmax.f32 %v416_v49, 0.0  ;;  %v419_v57 = vadd.f32 %v3087_v53, %v4198_v51  ;;  %v410_v58 = vpop.f32.mrb[27].mxu0  ;;  %889 = vmatpush1.bf16.msra.mxu0 %v3416_v47  ;;  %v3817_v49 = vmov 0  }
 0x1b8   :  { %v462_v59 = vmax.f32 %v408_v52, 0.0  ;;  %v411_v60 = vadd.f32 %v4198_v51, %v410_v58  ;;  %906 = vmatprep.mubr.bf16.mxu0 %v3817_v49 }
 0x1b9   :  { %v465_v63 = vmax.f32 %v419_v57, 0.0 }
 0x1ba   :  { %v463_v0 = vmax.f32 %v411_v60, 0.0 }
 0x1bb   :  { %v483_v1 = vpack.c.bf16 %v465_v63, %v464_v56 }
 0x1bc   :  { %v482_v2 = vpack.c.bf16 %v463_v0, %v462_v59  ;;  %v3090_v5 = vpop.f32.mrb[28].mxu0 }
 0x1bd   :  { %v432_v9 = vadd.f32 %v3090_v5, %v4198_v51  ;;  %v423_v18 = vpop.f32.mrb[29].mxu0 }
 0x1be   :  { %3132 = vmatprep.mubr.bf16.mxu1 %v482_v2  ;;  %v424_v19 = vadd.f32 %v4198_v51, %v423_v18  ;;  %v3091_v20 = vpop.f32.mrb[30].mxu0 }
 0x1bf   :  { %3133 = vmatmul.mubr.bf16.gmra.mrb[24].mxu1 %v483_v1  ;;  %v468_v24 = vmax.f32 %v432_v9, 0.0  ;;  %v435_v25 = vadd.f32 %v3091_v20, %v4198_v51  ;;  %v426_v26 = vpop.f32.mrb[31].mxu0 }
 0x1c0   :  { %v466_v30 = vmax.f32 %v424_v19, 0.0  ;;  %v427_v31 = vadd.f32 %v4198_v51, %v426_v26 }
 0x1c1   :  { %v469_v32 = vmax.f32 %v435_v25, 0.0 }
 0x1c2   :  { %v467_v36 = vmax.f32 %v427_v31, 0.0 }
 0x1c3   :  { %v485_v37 = vpack.c.bf16 %v469_v32, %v468_v24 }
 0x1c4   :  { %v484_v46 = vpack.c.bf16 %v467_v36, %v466_v30 }
 0x1c6   :  { %3136 = vmatprep.mubr.bf16.mxu1 %v484_v46 }
 0x1c7   :  { %3137 = vmatmul.mubr.bf16.gmra.mrb[28].mxu1 %v485_v37 }
 0x262   :  { %v3110_v52 = vpop.f32.mrb[0].mxu1 }
 0x263   :  { %v600_v51 = vadd.f32 %v3110_v52, %v4236_v50  ;;  %v591_v53 = vpop.f32.mrb[1].mxu1 }
 0x264   :  { %v592_v56 = vadd.f32 %v4236_v50, %v591_v53  ;;  %v3111_v57 = vpop.f32.mrb[2].mxu1 }
 0x265   :  { %v603_v58 = vadd.f32 %v3111_v57, %v4236_v50  ;;  %v594_v59 = vpop.f32.mrb[3].mxu1  ;;  %v720_v63 = vmax.f32 %v600_v51, 0.0 }
 0x266   :  { %v595_v60 = vadd.f32 %v4236_v50, %v594_v59  ;;  %v718_v1 = vmax.f32 %v592_v56, 0.0 }
 0x267   :  { %v721_v0 = vmax.f32 %v603_v58, 0.0 }
 0x268   :  { %v719_v2 = vmax.f32 %v595_v60, 0.0 }
 0x269   :  { %v751_v5 = vpack.c.bf16 %v721_v0, %v720_v63 }
 0x26a   :  { %v750_v9 = vpack.c.bf16 %v719_v2, %v718_v1  ;;  %v3114_v18 = vpop.f32.mrb[4].mxu1 }
 0x26b   :  { %v616_v19 = vadd.f32 %v3114_v18, %v4236_v50  ;;  %v607_v20 = vpop.f32.mrb[5].mxu1 }
 0x26c   :  { %v608_v24 = vadd.f32 %v4236_v50, %v607_v20  ;;  %907 = vmatmul.mubr.bf16.vlgmr.msra.gmra.mrb[32].mxu0 %v750_v9  ;;  %v3115_v25 = vpop.f32.mrb[6].mxu1 }
 0x26d   :  { %v724_v26 = vmax.f32 %v616_v19, 0.0  ;;  %v619_v30 = vadd.f32 %v3115_v25, %v4236_v50  ;;  %v610_v31 = vpop.f32.mrb[7].mxu1  ;;  %916 = vmatprep.mubr.bf16.mxu0 %v3817_v49 }
 0x26e   :  { %v722_v32 = vmax.f32 %v608_v24, 0.0  ;;  %v611_v36 = vadd.f32 %v4236_v50, %v610_v31 }
 0x26f   :  { %v725_v37 = vmax.f32 %v619_v30, 0.0 }
 0x270   :  { %v723_v46 = vmax.f32 %v611_v36, 0.0 }
 0x271   :  { %v753_v47 = vpack.c.bf16 %v725_v37, %v724_v26 }
 0x272   :  { %v752_v48 = vpack.c.bf16 %v723_v46, %v722_v32  ;;  %v3118_v52 = vpop.f32.mrb[8].mxu1 }
 0x273   :  { %v632_v51 = vadd.f32 %v3118_v52, %v4236_v50  ;;  %v623_v53 = vpop.f32.mrb[9].mxu1 }
 0x274   :  { %917 = vmatmul.mubr.bf16.gmra.mrb[36].mxu0 %v751_v5  ;;  %v624_v56 = vadd.f32 %v4236_v50, %v623_v53  ;;  %v3119_v57 = vpop.f32.mrb[10].mxu1 }
 0x275   :  { %v728_v58 = vmax.f32 %v632_v51, 0.0  ;;  %926 = vmatprep.mubr.bf16.mxu0 %v3817_v49  ;;  %v635_v59 = vadd.f32 %v3119_v57, %v4236_v50  ;;  %v626_v60 = vpop.f32.mrb[11].mxu1 }
 0x276   :  { %v726_v63 = vmax.f32 %v624_v56, 0.0  ;;  %v627_v0 = vadd.f32 %v4236_v50, %v626_v60 }
 0x277   :  { %v729_v1 = vmax.f32 %v635_v59, 0.0 }
 0x278   :  { %v727_v2 = vmax.f32 %v627_v0, 0.0 }
 0x279   :  { %v755_v9 = vpack.c.bf16 %v729_v1, %v728_v58 }
 0x27a   :  { %v754_v18 = vpack.c.bf16 %v727_v2, %v726_v63  ;;  %v3122_v19 = vpop.f32.mrb[12].mxu1 }
 0x27b   :  { %v648_v20 = vadd.f32 %v3122_v19, %v4236_v50  ;;  %v639_v5 = vpop.f32.mrb[13].mxu1 }
 0x27c   :  { %927 = vmatmul.mubr.bf16.gmra.mrb[40].mxu0 %v752_v48  ;;  %v640_v24 = vadd.f32 %v4236_v50, %v639_v5  ;;  %v3123_v25 = vpop.f32.mrb[14].mxu1 }
 0x27d   :  { %936 = vmatprep.mubr.bf16.mxu0 %v3817_v49  ;;  %v732_v26 = vmax.f32 %v648_v20, 0.0  ;;  %v651_v30 = vadd.f32 %v3123_v25, %v4236_v50  ;;  %v642_v31 = vpop.f32.mrb[15].mxu1 }
 0x27e   :  { %v730_v32 = vmax.f32 %v640_v24, 0.0  ;;  %v643_v36 = vadd.f32 %v4236_v50, %v642_v31 }
 0x27f   :  { %v733_v37 = vmax.f32 %v651_v30, 0.0 }
 0x280   :  { %v731_v46 = vmax.f32 %v643_v36, 0.0 }
 0x281   :  { %v4257_v52 = vpack.c.bf16 %v733_v37, %v732_v26 }
 0x282   :  { %v756_v51 = vpack.c.bf16 %v731_v46, %v730_v32  ;;  %v3126_v53 = vpop.f32.mrb[16].mxu1 }
 0x283   :  { %v664_v48 = vadd.f32 %v3126_v53, %v4236_v50  ;;  %v655_v56 = vpop.f32.mrb[17].mxu1 }
 0x284   :  { %937 = vmatmul.mubr.bf16.gmra.mrb[44].mxu0 %v753_v47  ;;  %v656_v57 = vadd.f32 %v4236_v50, %v655_v56  ;;  %v3127_v58 = vpop.f32.mrb[18].mxu1 }
 0x285   :  { %946 = vmatprep.mubr.bf16.mxu0 %v3817_v49  ;;  %v736_v59 = vmax.f32 %v664_v48, 0.0  ;;  %v667_v60 = vadd.f32 %v3127_v58, %v4236_v50  ;;  %v658_v63 = vpop.f32.mrb[19].mxu1 }
 0x286   :  { %v734_v0 = vmax.f32 %v656_v57, 0.0  ;;  %v659_v1 = vadd.f32 %v4236_v50, %v658_v63 }
 0x287   :  { %v737_v2 = vmax.f32 %v667_v60, 0.0 }
 0x288   :  { %v735_v19 = vmax.f32 %v659_v1, 0.0 }
 0x289   :  { %v759_v20 = vpack.c.bf16 %v737_v2, %v736_v59 }
 0x28a   :  { %v758_v5 = vpack.c.bf16 %v735_v19, %v734_v0  ;;  %v3130_v24 = vpop.f32.mrb[20].mxu1 }
 0x28b   :  { %v680_v25 = vadd.f32 %v3130_v24, %v4236_v50  ;;  %v671_v47 = vpop.f32.mrb[21].mxu1 }
 0x28c   :  { %947 = vmatmul.mubr.bf16.gmra.mrb[48].mxu0 %v754_v18  ;;  %v672_v26 = vadd.f32 %v4236_v50, %v671_v47  ;;  %v3131_v30 = vpop.f32.mrb[22].mxu1 }
 0x28d   :  { %956 = vmatprep.mubr.bf16.mxu0 %v3817_v49  ;;  %v740_v31 = vmax.f32 %v680_v25, 0.0  ;;  %v683_v32 = vadd.f32 %v3131_v30, %v4236_v50  ;;  %v674_v36 = vpop.f32.mrb[23].mxu1 }
 0x28e   :  { %v738_v37 = vmax.f32 %v672_v26, 0.0  ;;  %v675_v46 = vadd.f32 %v4236_v50, %v674_v36 }
 0x28f   :  { %v741_v53 = vmax.f32 %v683_v32, 0.0 }
 0x290   :  { %v739_v48 = vmax.f32 %v675_v46, 0.0 }
 0x291   :  { %v761_v56 = vpack.c.bf16 %v741_v53, %v740_v31 }
 0x292   :  { %v760_v57 = vpack.c.bf16 %v739_v48, %v738_v37  ;;  %v3134_v58 = vpop.f32.mrb[24].mxu1 }
 0x293   :  { %v696_v59 = vadd.f32 %v3134_v58, %v4236_v50  ;;  %v687_v18 = vpop.f32.mrb[25].mxu1 }
 0x294   :  { %957 = vmatmul.mubr.bf16.gmra.mrb[52].mxu0 %v755_v9  ;;  %v688_v60 = vadd.f32 %v4236_v50, %v687_v18  ;;  %v3135_v63 = vpop.f32.mrb[26].mxu1 }
 0x295   :  { %966 = vmatprep.mubr.bf16.mxu0 %v3817_v49  ;;  %v744_v0 = vmax.f32 %v696_v59, 0.0  ;;  %v699_v1 = vadd.f32 %v3135_v63, %v4236_v50  ;;  %v690_v2 = vpop.f32.mrb[27].mxu1 }
 0x296   :  { %v742_v19 = vmax.f32 %v688_v60, 0.0  ;;  %v691_v24 = vadd.f32 %v4236_v50, %v690_v2  ;;  %v4288_v2 = vld [vmem:[#allocation10] sm:$0xff]  }
 0x297   :  { %v745_v25 = vmax.f32 %v699_v1, 0.0  ;;  %v3426_v1 = vld [vmem:[#allocation11 + $0x38] sm:$0xff]  }
 0x298   :  { %v743_v47 = vmax.f32 %v691_v24, 0.0 }
 0x299   :  { %v763_v26 = vpack.c.bf16 %v745_v25, %v744_v0  ;;  %v782_v25 = vld [vmem:[%s5001_s6] sm:$0x3]  ;;  %s3818_s6 = smov 16  }
 0x29a   :  { %v762_v30 = vpack.c.bf16 %v743_v47, %v742_v19  ;;  %v3138_v31 = vpop.f32.mrb[28].mxu1  ;;  %v785_v19 = vshrl.u32 %v784_v6, 7 }
 0x29b   :  { %v712_v32 = vadd.f32 %v3138_v31, %v4236_v50  ;;  %v703_v9 = vpop.f32.mrb[29].mxu1 }
 0x29c   :  { %967 = vmatmul.mubr.bf16.gmra.mrb[56].mxu0 %v756_v51  ;;  %v704_v36 = vadd.f32 %v4236_v50, %v703_v9  ;;  %v3139_v37 = vpop.f32.mrb[30].mxu1  ;;  %v3419_v51 = vld [vmem:[#allocation11] sm:$0xff]   ;;  %v786_v24 = vsub.s32 0, %v785_v19  ;;  %v790_v47 = vsub.s32 1, %v785_v19 }
 0x29d   :  { %976 = vmatprep.mubr.bf16.mxu0 %v3817_v49  ;;  %v748_v46 = vmax.f32 %v712_v32, 0.0  ;;  %v715_v53 = vadd.f32 %v3139_v37, %v4236_v50  ;;  %v706_v48 = vpop.f32.mrb[31].mxu1  ;;  %3140 = vmatprep.subr.bf16.mxu1 %v3419_v51 }
 0x29e   :  { %v746_v58 = vmax.f32 %v704_v36, 0.0  ;;  %v707_v59 = vadd.f32 %v4236_v50, %v706_v48  ;;  %3141 = vmatpush3.bf16.msra.mxu1 %v3419_v51  ;;  %v3420_v50 = vld [vmem:[#allocation11 + $0x8] sm:$0xff]  }
 0x29f   :  { %v749_v18 = vmax.f32 %v715_v53, 0.0  ;;  %3142 = vmatprep.subr.bf16.mxu1 %v3420_v50 }
 0x2a0   :  { %v747_v60 = vmax.f32 %v707_v59, 0.0 }
 0x2a1   :  { %v765_v63 = vpack.c.bf16 %v749_v18, %v748_v46 }
 0x2a2   :  { %v764_v0 = vpack.c.bf16 %v747_v60, %v746_v58  ;;  %3143 = vmatpush3.bf16.msra.mxu1 %v3420_v50 }
 0x2a4   :  { %977 = vmatmul.mubr.bf16.gmra.mrb[60].mxu0 %v4257_v52  ;;  %v3421_v52 = vld [vmem:[#allocation11 + $0x10] sm:$0xff]  }
 0x2a5   :  { %986 = vmatprep.mubr.bf16.mxu0 %v3817_v49  ;;  %3144 = vmatprep.subr.bf16.mxu1 %v3421_v52 }
 0x2a6   :  { %3145 = vmatpush3.bf16.msra.mxu1 %v3421_v52 }
 0x2ac   :  { %987 = vmatmul.mubr.bf16.gmra.mrb[64].mxu0 %v758_v5  ;;  %v3423_v5 = vld [vmem:[#allocation11 + $0x20] sm:$0xff]  }
 0x2ad   :  { %996 = vmatprep.mubr.bf16.mxu0 %v3817_v49 }
 0x2b4   :  { %997 = vmatmul.mubr.bf16.gmra.mrb[68].mxu0 %v759_v20  ;;  %v3422_v20 = vld [vmem:[#allocation11 + $0x18] sm:$0xff]  }
 0x2b5   :  { %1006 = vmatprep.mubr.bf16.mxu0 %v3817_v49  ;;  %3146 = vmatprep.subr.bf16.mxu1 %v3422_v20 }
 0x2b6   :  { %3147 = vmatpush3.bf16.msra.mxu1 %v3422_v20 }
 0x2b7   :  { %3148 = vmatprep.subr.bf16.mxu1 %v3423_v5 }
 0x2ba   :  { %3149 = vmatpush3.bf16.msra.mxu1 %v3423_v5 }
 0x2bc   :  { %1007 = vmatmul.mubr.bf16.gmra.mrb[72].mxu0 %v760_v57  ;;  %v3425_v57 = vld [vmem:[#allocation11 + $0x30] sm:$0xff]  }
 0x2bd   :  { %1016 = vmatprep.mubr.bf16.mxu0 %v3817_v49 }
 0x2c4   :  { %1017 = vmatmul.mubr.bf16.gmra.mrb[76].mxu0 %v761_v56  ;;  %v3424_v56 = vld [vmem:[#allocation11 + $0x28] sm:$0xff]  }
 0x2c5   :  { %1026 = vmatprep.mubr.bf16.mxu0 %v3817_v49  ;;  %3150 = vmatprep.subr.bf16.mxu1 %v3424_v56 }
 0x2c6   :  { %3151 = vmatpush3.bf16.msra.mxu1 %v3424_v56 }
 0x2c7   :  { %3152 = vmatprep.subr.bf16.mxu1 %v3425_v57 }
 0x2ca   :  { %3153 = vmatpush3.bf16.msra.mxu1 %v3425_v57 }
 0x2cb   :  { %3154 = vmatprep.subr.bf16.mxu1 %v3426_v1 }
 0x2cc   :  { %1027 = vmatmul.mubr.bf16.gmra.mrb[80].mxu0 %v762_v30 }
 0x2cd   :  { %1036 = vmatprep.mubr.bf16.mxu0 %v3817_v49 }
 0x2ce   :  { %3155 = vmatpush3.bf16.msra.mxu1 %v3426_v1 }
 0x2cf   :  { %3188 = vmatprep.subr.bf16.mxu1 %v4288_v2 }
 0x2d4   :  { %1037 = vmatmul.mubr.bf16.gmra.mrb[84].mxu0 %v763_v26  ;;  %v4295_v26 = vrot.slane %v782_v25, %v786_v24 }
 0x2d5   :  { %1046 = vmatprep.mubr.bf16.mxu0 %v3817_v49 }
 0x2dc   :  { %1047 = vmatmul.mubr.bf16.gmra.mrb[88].mxu0 %v764_v0 }
 0x2dd   :  { %1056 = vmatprep.mubr.bf16.mxu0 %v3817_v49  ;;  %v4297_v49 = vrot.slane %v782_v25, %v790_v47 }
 0x2e4   :  { %1057 = vmatmul.mubr.bf16.gmra.mrb[92].mxu0 %v765_v63 }
 0x33f   :  { %v908_v30 = vpop.f32.mrb[32].mxu0 }
 0x340   :  { %v909_v31 = vadd.f32 %v908_v30, %v4295_v26  ;;  %v910_v32 = vpop.f32.mrb[33].mxu0 }
 0x341   :  { %v911_v9 = vadd.f32 %v910_v32, %v4297_v49  ;;  %v912_v36 = vpop.f32.mrb[34].mxu0 }
 0x342   :  { %v914_v37 = vpop.f32.mrb[35].mxu0  ;;  %2455 = vrot.lane.b32.xlu0 %v909_v31, %s3811_s25  ;;  %v913_v53 = vadd.f32 %v912_v36, %v4295_v26 }
 0x343   :  { %v1067_v6 = vmax.f32 %v911_v9, -4.0  ;;  %v915_v46 = vadd.f32 %v914_v37, %v4297_v49  ;;  %v3579_v9 = vld [vmem:[#allocation2] sm:$0xff] }
 0x344   :  { %v1198_v36 = vsel %vm1197_vm0, %v3579_v9, 0.0 }
 0x345   :  { %v1099_v48 = vmin.f32 %v1067_v6, 15.0  ;;  %v1068_v58 = vmax.f32 %v915_v46, -4.0 }
 0x346   :  { %2457 = vrot.lane.b32.xlu0 %v913_v53, %s3811_s25 }
 0x347   :  { %v1131_v59 = vmul.f32 1.442695, %v1099_v48  ;;  %v1100_v18 = vmin.f32 %v1068_v58, 15.0  ;;  %v918_v60 = vpop.f32.mrb[36].mxu0 }
 0x348   :  { %v4306_v63 = vadd.f32 %v918_v60, %v4295_v26  ;;  %v920_v0 = vpop.f32.mrb[37].mxu0 }
 0x349   :  { %3451 = vpow2.f32 %v1131_v59  ;;  %v1133_v51 = vmul.f32 1.442695, %v1100_v18  ;;  %v921_v50 = vadd.f32 %v920_v0, %v4297_v49  ;;  %v922_v52 = vpop.f32.mrb[38].mxu0  ;;  %v3580_v18 = vld [vmem:[#allocation2 + $0x8] sm:$0xff] }
 0x34a   :  { %v924_v20 = vpop.f32.mrb[39].mxu0  ;;  %2459 = vrot.lane.b32.xlu1 %v4306_v63, %s3811_s25  ;;  %v4313_v57 = vadd.f32 %v922_v52, %v4295_v26  ;;  %v1199_v60 = vsel %vm1197_vm0, %v3580_v18, 0.0 }
 0x34b   :  { %3453 = vpow2.f32 %v1133_v51  ;;  %v1069_v5 = vmax.f32 %v921_v50, -4.0  ;;  %v925_v56 = vadd.f32 %v924_v20, %v4297_v49 }
 0x34d   :  { %v1101_v1 = vmin.f32 %v1069_v5, 15.0  ;;  %v1070_v19 = vmax.f32 %v925_v56, -4.0 }
 0x34e   :  { %2461 = vrot.lane.b32.xlu1 %v4313_v57, %s3811_s25 }
 0x34f   :  { %v1135_v24 = vmul.f32 1.442695, %v1101_v1  ;;  %v1102_v25 = vmin.f32 %v1070_v19, 15.0  ;;  %v928_v47 = vpop.f32.mrb[40].mxu0 }
 0x350   :  { %v4318_v30 = vadd.f32 %v928_v47, %v4295_v26  ;;  %v930_v32 = vpop.f32.mrb[41].mxu0 }
 0x351   :  { %3455 = vpow2.f32 %v1135_v24  ;;  %v1137_v37 = vmul.f32 1.442695, %v1102_v25  ;;  %v931_v6 = vadd.f32 %v930_v32, %v4297_v49  ;;  %v932_v46 = vpop.f32.mrb[42].mxu0 }
 0x352   :  { %v4324_v48 = vadd.f32 %v932_v46, %v4295_v26  ;;  %v934_v58 = vpop.f32.mrb[43].mxu0  ;;  %2463 = vrot.lane.b32.xlu0 %v4318_v30, %s3811_s25 }
 0x353   :  { %v3452_v59 = vpop.eup %3451  ;;  %3457 = vpow2.f32 %v1137_v37  ;;  %v1071_v0 = vmax.f32 %v931_v6, -4.0  ;;  %v935_v51 = vadd.f32 %v934_v58, %v4297_v49  ;;  %v3581_v37 = vld [vmem:[#allocation2 + $0x10] sm:$0xff] }
 0x354   :  { %2465 = vrot.lane.b32.xlu1 %v4324_v48, %s3811_s25  ;;  %v1230_v50 = vmul.f32 %v3452_v59, %v1198_v36  ;;  %v1200_v36 = vsel %vm1197_vm0, %v3581_v37, 0.0 }
 0x355   :  { %v3454_v52 = vpop.eup %3453  ;;  %v1103_v20 = vmin.f32 %v1071_v0, 15.0  ;;  %v1072_v5 = vmax.f32 %v935_v51, -4.0  ;;  %v3582_v0 = vld [vmem:[#allocation2 + $0x18] sm:$0xff] }
 0x356   :  { %2583 = vrot.lane.b32.xlu0 %v3452_v59, %s3818_s6  ;;  %v1231_v56 = vmul.f32 %v3454_v52, %v1199_v60  ;;  %v1262_v1 = vadd.f32 %v1230_v50, %v909_v31 }
 0x357   :  { %v1139_v19 = vmul.f32 1.442695, %v1103_v20  ;;  %v1104_v24 = vmin.f32 %v1072_v5, 15.0  ;;  %v938_v25 = vpop.f32.mrb[44].mxu0 }
 0x358   :  { %v4335_v47 = vadd.f32 %v938_v25, %v4295_v26  ;;  %v940_v32 = vpop.f32.mrb[45].mxu0  ;;  %2585 = vrot.lane.b32.xlu1 %v3454_v52, %s3818_s6  ;;  %v1263_v9 = vadd.f32 %v1231_v56, %v913_v53  ;;  %v1201_v53 = vsel %vm1197_vm0, %v3582_v0, 0.0 }
 0x359   :  { %3459 = vpow2.f32 %v1139_v19  ;;  %v1141_v6 = vmul.f32 1.442695, %v1104_v24  ;;  %v941_v46 = vadd.f32 %v940_v32, %v4297_v49  ;;  %v942_v58 = vpop.f32.mrb[46].mxu0 }
 0x35a   :  { %v4342_v31 = vadd.f32 %v942_v58, %v4295_v26  ;;  %v944_v59 = vpop.f32.mrb[47].mxu0  ;;  %2467 = vrot.lane.b32.xlu0 %v4335_v47, %s3811_s25  ;;  %v1310_v18 = vpack.c.bf16 %v1263_v9, %v1262_v1 }
 0x35b   :  { %v3456_v60 = vpop.eup %3455  ;;  %3461 = vpow2.f32 %v1141_v6  ;;  %v1073_v51 = vmax.f32 %v941_v46, -4.0  ;;  %v945_v50 = vadd.f32 %v944_v59, %v4297_v49  ;;  %v3583_v6 = vld [vmem:[#allocation2 + $0x20] sm:$0xff] }
 0x35c   :  { %v1232_v52 = vmul.f32 %v3456_v60, %v1200_v36  ;;  %2469 = vrot.lane.b32.xlu1 %v4342_v31, %s3811_s25  ;;  %3156 = vmatprep.mubr.bf16.mxu1 %v1310_v18  ;;  %v1202_v46 = vsel %vm1197_vm0, %v3583_v6, 0.0 }
 0x35d   :  { %v3458_v20 = vpop.eup %3457  ;;  %v1105_v5 = vmin.f32 %v1073_v51, 15.0  ;;  %v1074_v56 = vmax.f32 %v945_v50, -4.0 }
 0x35e   :  { %v1233_v19 = vmul.f32 %v3458_v20, %v1201_v53  ;;  %2587 = vrot.lane.b32.xlu0 %v3456_v60, %s3818_s6  ;;  %v1264_v1 = vadd.f32 %v1232_v52, %v4306_v63  ;;  %v3428_v53 = vld [vmem:[#allocation10 + $0x8] sm:$0xff]  }
 0x35f   :  { %v1143_v24 = vmul.f32 1.442695, %v1105_v5  ;;  %v1106_v25 = vmin.f32 %v1074_v56, 15.0  ;;  %v948_v32 = vpop.f32.mrb[48].mxu0 }
 0x360   :  { %v4354_v9 = vadd.f32 %v948_v32, %v4295_v26  ;;  %v950_v37 = vpop.f32.mrb[49].mxu0  ;;  %2589 = vrot.lane.b32.xlu1 %v3458_v20, %s3818_s6  ;;  %v1265_v36 = vadd.f32 %v1233_v19, %v4313_v57  ;;  %v3584_v57 = vld [vmem:[#allocation2 + $0x28] sm:$0xff]  ;;  %v3429_v32 = vld [vmem:[#allocation10 + $0x10] sm:$0xff]  }
 0x361   :  { %3463 = vpow2.f32 %v1143_v24  ;;  %v1145_v58 = vmul.f32 1.442695, %v1106_v25  ;;  %v951_v59 = vadd.f32 %v950_v37, %v4297_v49  ;;  %v952_v63 = vpop.f32.mrb[50].mxu0  ;;  %v1203_v50 = vsel %vm1197_vm0, %v3584_v57, 0.0 }
 0x362   :  { %v4362_v18 = vadd.f32 %v952_v63, %v4295_v26  ;;  %v954_v60 = vpop.f32.mrb[51].mxu0  ;;  %2471 = vrot.lane.b32.xlu0 %v4354_v9, %s3811_s25  ;;  %v1311_v0 = vpack.c.bf16 %v1265_v36, %v1264_v1  ;;  %v3585_v63 = vld [vmem:[#allocation2 + $0x30] sm:$0xff] }
 0x363   :  { %v3460_v51 = vpop.eup %3459  ;;  %3465 = vpow2.f32 %v1145_v58  ;;  %v1075_v52 = vmax.f32 %v951_v59, -4.0  ;;  %v955_v20 = vadd.f32 %v954_v60, %v4297_v49 }
 0x364   :  { %2473 = vrot.lane.b32.xlu1 %v4362_v18, %s3811_s25  ;;  %3157 = vmatmul.mubr.bf16.vlgmr.msra.gmra.mrb[32].mxu1 %v1311_v0  ;;  %v1234_v5 = vmul.f32 %v3460_v51, %v1202_v46 }
 0x365   :  { %v3462_v56 = vpop.eup %3461  ;;  %v1107_v19 = vmin.f32 %v1075_v52, 15.0  ;;  %v1076_v24 = vmax.f32 %v955_v20, -4.0  ;;  %3189 = vmatpush3.bf16.msra.mxu1 %v4288_v2  ;;  %v1204_v2 = vsel %vm1197_vm0, %v3585_v63, 0.0  ;;  %v3586_v20 = vld [vmem:[#allocation2 + $0x38] sm:$0xff] }
 0x366   :  { %2591 = vrot.lane.b32.xlu0 %v3460_v51, %s3818_s6  ;;  %v1235_v1 = vmul.f32 %v3462_v56, %v1203_v50  ;;  %v1266_v25 = vadd.f32 %v1234_v5, %v4318_v30  ;;  %3190 = vmatprep.subr.bf16.mxu1 %v3428_v53  ;;  %v1205_v5 = vsel %vm1197_vm0, %v3586_v20, 0.0 }
 0x367   :  { %v1147_v37 = vmul.f32 1.442695, %v1107_v19  ;;  %v1108_v36 = vmin.f32 %v1076_v24, 15.0  ;;  %v958_v6 = vpop.f32.mrb[52].mxu0 }
 0x368   :  { %v4375_v58 = vadd.f32 %v958_v6, %v4295_v26  ;;  %v960_v59 = vpop.f32.mrb[53].mxu0  ;;  %2593 = vrot.lane.b32.xlu1 %v3462_v56, %s3818_s6  ;;  %v1267_v46 = vadd.f32 %v1235_v1, %v4324_v48  ;;  %v3430_v48 = vld [vmem:[#allocation10 + $0x18] sm:$0xff]   ;;  %v3431_v6 = vld [vmem:[#allocation10 + $0x20] sm:$0xff]  }
 0x369   :  { %3467 = vpow2.f32 %v1147_v37  ;;  %v1149_v60 = vmul.f32 1.442695, %v1108_v36  ;;  %v961_v30 = vadd.f32 %v960_v59, %v4297_v49  ;;  %v962_v0 = vpop.f32.mrb[54].mxu0  ;;  %3191 = vmatpush3.bf16.msra.mxu1 %v3428_v53 }
 0x36a   :  { %v4383_v51 = vadd.f32 %v962_v0, %v4295_v26  ;;  %v964_v57 = vpop.f32.mrb[55].mxu0  ;;  %2475 = vrot.lane.b32.xlu0 %v4375_v58, %s3811_s25  ;;  %v1312_v50 = vpack.c.bf16 %v1267_v46, %v1266_v25  ;;  %3192 = vmatprep.subr.bf16.mxu1 %v3429_v32  ;;  %v3587_v0 = vld [vmem:[#allocation2 + $0x40] sm:$0xff] }
 0x36b   :  { %v3464_v52 = vpop.eup %3463  ;;  %3469 = vpow2.f32 %v1149_v60  ;;  %v1077_v56 = vmax.f32 %v961_v30, -4.0  ;;  %v965_v19 = vadd.f32 %v964_v57, %v4297_v49 }
 0x36c   :  { %2477 = vrot.lane.b32.xlu1 %v4383_v51, %s3811_s25  ;;  %3160 = vmatprep.mubr.bf16.mxu1 %v1312_v50  ;;  %v1236_v53 = vmul.f32 %v3464_v52, %v1204_v2 }
 0x36d   :  { %v3466_v24 = vpop.eup %3465  ;;  %v1109_v1 = vmin.f32 %v1077_v56, 15.0  ;;  %v1078_v37 = vmax.f32 %v965_v19, -4.0  ;;  %3193 = vmatpush3.bf16.msra.mxu1 %v3429_v32  ;;  %v1206_v32 = vsel %vm1197_vm0, %v3587_v0, 0.0  ;;  %v3588_v19 = vld [vmem:[#allocation2 + $0x48] sm:$0xff] }
 0x36e   :  { %2595 = vrot.lane.b32.xlu0 %v3464_v52, %s3818_s6  ;;  %v1237_v25 = vmul.f32 %v3466_v24, %v1205_v5  ;;  %v1268_v36 = vadd.f32 %v1236_v53, %v4335_v47  ;;  %3194 = vmatprep.subr.bf16.mxu1 %v3430_v48  ;;  %v1207_v53 = vsel %vm1197_vm0, %v3588_v19, 0.0 }
 0x36f   :  { %v1151_v59 = vmul.f32 1.442695, %v1109_v1  ;;  %v1110_v46 = vmin.f32 %v1078_v37, 15.0  ;;  %v968_v63 = vpop.f32.mrb[56].mxu0 }
 0x370   :  { %v4395_v60 = vadd.f32 %v968_v63, %v4295_v26  ;;  %v970_v30 = vpop.f32.mrb[57].mxu0  ;;  %2597 = vrot.lane.b32.xlu1 %v3466_v24, %s3818_s6  ;;  %v1269_v2 = vadd.f32 %v1237_v25, %v4342_v31  ;;  %v3432_v31 = vld [vmem:[#allocation10 + $0x28] sm:$0xff]   ;;  %v3433_v63 = vld [vmem:[#allocation10 + $0x30] sm:$0xff]  }
 0x371   :  { %3471 = vpow2.f32 %v1151_v59  ;;  %v1153_v57 = vmul.f32 1.442695, %v1110_v46  ;;  %v971_v47 = vadd.f32 %v970_v30, %v4297_v49  ;;  %v972_v50 = vpop.f32.mrb[58].mxu0  ;;  %3195 = vmatpush3.bf16.msra.mxu1 %v3430_v48 }
 0x372   :  { %v4403_v52 = vadd.f32 %v972_v50, %v4295_v26  ;;  %v974_v20 = vpop.f32.mrb[59].mxu0  ;;  %2479 = vrot.lane.b32.xlu0 %v4395_v60, %s3811_s25  ;;  %v1313_v5 = vpack.c.bf16 %v1269_v2, %v1268_v36  ;;  %3196 = vmatprep.subr.bf16.mxu1 %v3431_v6  ;;  %v3589_v50 = vld [vmem:[#allocation2 + $0x50] sm:$0xff] }
 0x373   :  { %v3468_v56 = vpop.eup %3467  ;;  %3473 = vpow2.f32 %v1153_v57  ;;  %v1079_v24 = vmax.f32 %v971_v47, -4.0  ;;  %v975_v1 = vadd.f32 %v974_v20, %v4297_v49 }
 0x374   :  { %2481 = vrot.lane.b32.xlu1 %v4403_v52, %s3811_s25  ;;  %3161 = vmatmul.mubr.bf16.gmra.mrb[36].mxu1 %v1313_v5  ;;  %v1238_v48 = vmul.f32 %v3468_v56, %v1206_v32 }
 0x375   :  { %v3470_v37 = vpop.eup %3469  ;;  %v1111_v25 = vmin.f32 %v1079_v24, 15.0  ;;  %v1080_v59 = vmax.f32 %v975_v1, -4.0  ;;  %3197 = vmatpush3.bf16.msra.mxu1 %v3431_v6  ;;  %v1208_v6 = vsel %vm1197_vm0, %v3589_v50, 0.0  ;;  %v3590_v1 = vld [vmem:[#allocation2 + $0x58] sm:$0xff] }
 0x376   :  { %2599 = vrot.lane.b32.xlu0 %v3468_v56, %s3818_s6  ;;  %v1239_v36 = vmul.f32 %v3470_v37, %v1207_v53  ;;  %v1270_v46 = vadd.f32 %v1238_v48, %v4354_v9  ;;  %3198 = vmatprep.subr.bf16.mxu1 %v3432_v31  ;;  %v1209_v48 = vsel %vm1197_vm0, %v3590_v1, 0.0 }
 0x377   :  { %v1155_v30 = vmul.f32 1.442695, %v1111_v25  ;;  %v1112_v2 = vmin.f32 %v1080_v59, 15.0  ;;  %v978_v0 = vpop.f32.mrb[60].mxu0 }
 0x378   :  { %v4415_v57 = vadd.f32 %v978_v0, %v4295_v26  ;;  %v980_v47 = vpop.f32.mrb[61].mxu0  ;;  %2601 = vrot.lane.b32.xlu1 %v3470_v37, %s3818_s6  ;;  %v1271_v32 = vadd.f32 %v1239_v36, %v4362_v18  ;;  %v3434_v18 = vld [vmem:[#allocation10 + $0x38] sm:$0xff]  }
 0x379   :  { %3475 = vpow2.f32 %v1155_v30  ;;  %v1157_v20 = vmul.f32 1.442695, %v1112_v2  ;;  %v981_v9 = vadd.f32 %v980_v47, %v4297_v49  ;;  %v982_v5 = vpop.f32.mrb[62].mxu0  ;;  %3199 = vmatpush3.bf16.msra.mxu1 %v3432_v31 }
 0x37a   :  { %v4423_v56 = vadd.f32 %v982_v5, %v4295_v26  ;;  %v984_v19 = vpop.f32.mrb[63].mxu0  ;;  %2483 = vrot.lane.b32.xlu0 %v4415_v57, %s3811_s25  ;;  %v1314_v53 = vpack.c.bf16 %v1271_v32, %v1270_v46  ;;  %3200 = vmatprep.subr.bf16.mxu1 %v3433_v63 }
 0x37b   :  { %v3472_v24 = vpop.eup %3471  ;;  %3477 = vpow2.f32 %v1157_v20  ;;  %v1081_v37 = vmax.f32 %v981_v9, -4.0  ;;  %v985_v25 = vadd.f32 %v984_v19, %v4297_v49  ;;  %v3591_v9 = vld [vmem:[#allocation2 + $0x60] sm:$0xff] }
 0x37c   :  { %2485 = vrot.lane.b32.xlu1 %v4423_v56, %s3811_s25  ;;  %3164 = vmatprep.mubr.bf16.mxu1 %v1314_v53  ;;  %v1240_v31 = vmul.f32 %v3472_v24, %v1208_v6 }
 0x37d   :  { %v3474_v59 = vpop.eup %3473  ;;  %v1113_v36 = vmin.f32 %v1081_v37, 15.0  ;;  %v1082_v30 = vmax.f32 %v985_v25, -4.0  ;;  %3201 = vmatpush3.bf16.msra.mxu1 %v3433_v63  ;;  %v1210_v63 = vsel %vm1197_vm0, %v3591_v9, 0.0 }
 0x37e   :  { %2603 = vrot.lane.b32.xlu0 %v3472_v24, %s3818_s6  ;;  %v1241_v46 = vmul.f32 %v3474_v59, %v1209_v48  ;;  %v1272_v2 = vadd.f32 %v1240_v31, %v4375_v58  ;;  %3202 = vmatprep.subr.bf16.mxu1 %v3434_v18 }
 0x37f   :  { %v1159_v0 = vmul.f32 1.442695, %v1113_v36  ;;  %v1114_v47 = vmin.f32 %v1082_v30, 15.0  ;;  %v988_v32 = vpop.f32.mrb[64].mxu0 }
 0x380   :  { %v4435_v50 = vadd.f32 %v988_v32, %v4295_v26  ;;  %v990_v20 = vpop.f32.mrb[65].mxu0  ;;  %2605 = vrot.lane.b32.xlu1 %v3474_v59, %s3818_s6  ;;  %v1273_v6 = vadd.f32 %v1241_v46, %v4383_v51  ;;  %v3592_v51 = vld [vmem:[#allocation2 + $0x68] sm:$0xff] }
 0x381   :  { %3479 = vpow2.f32 %v1159_v0  ;;  %v1161_v5 = vmul.f32 1.442695, %v1114_v47  ;;  %v991_v58 = vadd.f32 %v990_v20, %v4297_v49  ;;  %v992_v19 = vpop.f32.mrb[66].mxu0  ;;  %3203 = vmatpush3.bf16.msra.mxu1 %v3434_v18  ;;  %v1211_v37 = vsel %vm1197_vm0, %v3592_v51, 0.0 }
 0x382   :  { %v4443_v53 = vadd.f32 %v992_v19, %v4295_v26  ;;  %v994_v24 = vpop.f32.mrb[67].mxu0  ;;  %2487 = vrot.lane.b32.xlu0 %v4435_v50, %s3811_s25  ;;  %v1315_v1 = vpack.c.bf16 %v1273_v6, %v1272_v2 }
 0x383   :  { %v3476_v48 = vpop.eup %3475  ;;  %3481 = vpow2.f32 %v1161_v5  ;;  %v1083_v25 = vmax.f32 %v991_v58, -4.0  ;;  %v995_v31 = vadd.f32 %v994_v24, %v4297_v49 }
 0x384   :  { %2489 = vrot.lane.b32.xlu1 %v4443_v53, %s3811_s25  ;;  %3165 = vmatmul.mubr.bf16.gmra.mrb[40].mxu1 %v1315_v1  ;;  %v1242_v18 = vmul.f32 %v3476_v48, %v1210_v63  ;;  %v3593_v63 = vld [vmem:[#allocation2 + $0x70] sm:$0xff] }
 0x385   :  { %v3478_v59 = vpop.eup %3477  ;;  %v1115_v36 = vmin.f32 %v1083_v25, 15.0  ;;  %v1084_v30 = vmax.f32 %v995_v31, -4.0  ;;  %v1212_v5 = vsel %vm1197_vm0, %v3593_v63, 0.0 }
 0x386   :  { %2607 = vrot.lane.b32.xlu0 %v3476_v48, %s3818_s6  ;;  %v1243_v46 = vmul.f32 %v3478_v59, %v1211_v37  ;;  %v1274_v2 = vadd.f32 %v1242_v18, %v4395_v60  ;;  %v3594_v37 = vld [vmem:[#allocation2 + $0x78] sm:$0xff] }
 0x387   :  { %v1163_v0 = vmul.f32 1.442695, %v1115_v36  ;;  %v1116_v47 = vmin.f32 %v1084_v30, 15.0  ;;  %v998_v32 = vpop.f32.mrb[68].mxu0 }
 0x388   :  { %v4455_v20 = vadd.f32 %v998_v32, %v4295_v26  ;;  %v1000_v6 = vpop.f32.mrb[69].mxu0  ;;  %2609 = vrot.lane.b32.xlu1 %v3478_v59, %s3818_s6  ;;  %v1275_v9 = vadd.f32 %v1243_v46, %v4403_v52  ;;  %v1213_v52 = vsel %vm1197_vm0, %v3594_v37, 0.0 }
 0x389   :  { %3483 = vpow2.f32 %v1163_v0  ;;  %v1165_v58 = vmul.f32 1.442695, %v1116_v47  ;;  %v1001_v19 = vadd.f32 %v1000_v6, %v4297_v49  ;;  %v1002_v60 = vpop.f32.mrb[70].mxu0 }
 0x38a   :  { %v4463_v24 = vadd.f32 %v1002_v60, %v4295_v26  ;;  %v1004_v1 = vpop.f32.mrb[71].mxu0  ;;  %2491 = vrot.lane.b32.xlu0 %v4455_v20, %s3811_s25  ;;  %v1316_v48 = vpack.c.bf16 %v1275_v9, %v1274_v2 }
 0x38b   :  { %v3480_v51 = vpop.eup %3479  ;;  %3485 = vpow2.f32 %v1165_v58  ;;  %v1085_v25 = vmax.f32 %v1001_v19, -4.0  ;;  %v1005_v31 = vadd.f32 %v1004_v1, %v4297_v49 }
 0x38c   :  { %2493 = vrot.lane.b32.xlu1 %v4463_v24, %s3811_s25  ;;  %3168 = vmatprep.mubr.bf16.mxu1 %v1316_v48  ;;  %v1244_v18 = vmul.f32 %v3480_v51, %v1212_v5 }
 0x38d   :  { %v3482_v59 = vpop.eup %3481  ;;  %v1117_v36 = vmin.f32 %v1085_v25, 15.0  ;;  %v1086_v30 = vmax.f32 %v1005_v31, -4.0 }
 0x38e   :  { %2611 = vrot.lane.b32.xlu0 %v3480_v51, %s3818_s6  ;;  %v1245_v46 = vmul.f32 %v3482_v59, %v1213_v52  ;;  %v1276_v2 = vadd.f32 %v1244_v18, %v4415_v57 }
 0x38f   :  { %v1167_v0 = vmul.f32 1.442695, %v1117_v36  ;;  %v1118_v8 = vmin.f32 %v1086_v30, 15.0  ;;  %v1008_v47 = vpop.f32.mrb[72].mxu0 }
 0x390   :  { %v4475_v32 = vadd.f32 %v1008_v47, %v4295_v26  ;;  %v1010_v6 = vpop.f32.mrb[73].mxu0  ;;  %2613 = vrot.lane.b32.xlu1 %v3482_v59, %s3818_s6  ;;  %v1277_v9 = vadd.f32 %v1245_v46, %v4423_v56 }
 0x391   :  { %3487 = vpow2.f32 %v1167_v0  ;;  %v1169_v63 = vmul.f32 1.442695, %v1118_v8  ;;  %v1011_v5 = vadd.f32 %v1010_v6, %v4297_v49  ;;  %v1012_v58 = vpop.f32.mrb[74].mxu0 }
 0x392   :  { %v4481_v19 = vadd.f32 %v1012_v58, %v4295_v26  ;;  %v1014_v57 = vpop.f32.mrb[75].mxu0  ;;  %2495 = vrot.lane.b32.xlu0 %v4475_v32, %s3811_s25  ;;  %v1317_v60 = vpack.c.bf16 %v1277_v9, %v1276_v2 }
 0x393   :  { %v3484_v1 = vpop.eup %3483  ;;  %3489 = vpow2.f32 %v1169_v63  ;;  %v1087_v48 = vmax.f32 %v1011_v5, -4.0  ;;  %v1015_v51 = vadd.f32 %v1014_v57, %v4297_v49 }
 0x394   :  { %2497 = vrot.lane.b32.xlu1 %v4481_v19, %s3811_s25  ;;  %3169 = vmatmul.mubr.bf16.gmra.mrb[44].mxu1 %v1317_v60  ;;  %v1246_v56 = vmul.f32 %v3484_v1, %v4035_v16 }
 0x395   :  { %v3486_v37 = vpop.eup %3485  ;;  %v1119_v52 = vmin.f32 %v1087_v48, 15.0  ;;  %v1088_v25 = vmax.f32 %v1015_v51, -4.0 }
 0x396   :  { %2615 = vrot.lane.b32.xlu0 %v3484_v1, %s3818_s6  ;;  %v1247_v31 = vmul.f32 %v3486_v37, %v4040_v17  ;;  %v1278_v18 = vadd.f32 %v1246_v56, %v4435_v50 }
 0x397   :  { %v1171_v59 = vmul.f32 1.442695, %v1119_v52  ;;  %v1120_v36 = vmin.f32 %v1088_v25, 15.0  ;;  %v1018_v30 = vpop.f32.mrb[76].mxu0 }
 0x398   :  { %v4493_v46 = vadd.f32 %v1018_v30, %v4295_v26  ;;  %v1020_v2 = vpop.f32.mrb[77].mxu0  ;;  %2617 = vrot.lane.b32.xlu1 %v3486_v37, %s3818_s6  ;;  %v1279_v16 = vadd.f32 %v1247_v31, %v4443_v53 }
 0x399   :  { %3491 = vpow2.f32 %v1171_v59  ;;  %v1173_v0 = vmul.f32 1.442695, %v1120_v36  ;;  %v1021_v8 = vadd.f32 %v1020_v2, %v4297_v49  ;;  %v1022_v47 = vpop.f32.mrb[78].mxu0 }
 0x39a   :  { %v4499_v17 = vadd.f32 %v1022_v47, %v4295_v26  ;;  %v1024_v50 = vpop.f32.mrb[79].mxu0  ;;  %2499 = vrot.lane.b32.xlu0 %v4493_v46, %s3811_s25  ;;  %v1318_v6 = vpack.c.bf16 %v1279_v16, %v1278_v18 }
 0x39b   :  { %v3488_v9 = vpop.eup %3487  ;;  %3493 = vpow2.f32 %v1173_v0  ;;  %v1089_v63 = vmax.f32 %v1021_v8, -4.0  ;;  %v1025_v5 = vadd.f32 %v1024_v50, %v4297_v49 }
 0x39c   :  { %2501 = vrot.lane.b32.xlu1 %v4499_v17, %s3811_s25  ;;  %3172 = vmatprep.mubr.bf16.mxu1 %v1318_v6  ;;  %v1248_v53 = vmul.f32 %v3488_v9, %v4051_v21 }
 0x39d   :  { %v3490_v58 = vpop.eup %3489  ;;  %v1121_v57 = vmin.f32 %v1089_v63, 15.0  ;;  %v1090_v60 = vmax.f32 %v1025_v5, -4.0 }
 0x39e   :  { %2619 = vrot.lane.b32.xlu0 %v3488_v9, %s3818_s6  ;;  %v1249_v1 = vmul.f32 %v3490_v58, %v4056_v22  ;;  %v1280_v48 = vadd.f32 %v1248_v53, %v4455_v20 }
 0x39f   :  { %v1175_v51 = vmul.f32 1.442695, %v1121_v57  ;;  %v1122_v56 = vmin.f32 %v1090_v60, 15.0  ;;  %v1028_v37 = vpop.f32.mrb[80].mxu0 }
 0x3a0   :  { %v4511_v52 = vadd.f32 %v1028_v37, %v4295_v26  ;;  %v1030_v25 = vpop.f32.mrb[81].mxu0  ;;  %2621 = vrot.lane.b32.xlu1 %v3490_v58, %s3818_s6  ;;  %v1281_v21 = vadd.f32 %v1249_v1, %v4463_v24 }
 0x3a1   :  { %3495 = vpow2.f32 %v1175_v51  ;;  %v1177_v31 = vmul.f32 1.442695, %v1122_v56  ;;  %v1031_v18 = vadd.f32 %v1030_v25, %v4297_v49  ;;  %v1032_v59 = vpop.f32.mrb[82].mxu0 }
 0x3a2   :  { %v4517_v22 = vadd.f32 %v1032_v59, %v4295_v26  ;;  %v1034_v20 = vpop.f32.mrb[83].mxu0  ;;  %2503 = vrot.lane.b32.xlu0 %v4511_v52, %s3811_s25  ;;  %v1319_v36 = vpack.c.bf16 %v1281_v21, %v1280_v48 }
 0x3a3   :  { %v3492_v30 = vpop.eup %3491  ;;  %3497 = vpow2.f32 %v1177_v31  ;;  %v1091_v2 = vmax.f32 %v1031_v18, -4.0  ;;  %v1035_v16 = vadd.f32 %v1034_v20, %v4297_v49 }
 0x3a4   :  { %2505 = vrot.lane.b32.xlu1 %v4517_v22, %s3811_s25  ;;  %3173 = vmatmul.mubr.bf16.gmra.mrb[48].mxu1 %v1319_v36  ;;  %v1250_v24 = vmul.f32 %v3492_v30, %v4061_v23 }
 0x3a5   :  { %v3494_v0 = vpop.eup %3493  ;;  %v1123_v8 = vmin.f32 %v1091_v2, 15.0  ;;  %v1092_v47 = vmax.f32 %v1035_v16, -4.0 }
 0x3a6   :  { %2623 = vrot.lane.b32.xlu0 %v3492_v30, %s3818_s6  ;;  %v1251_v50 = vmul.f32 %v3494_v0, %v4072_v27  ;;  %v1282_v6 = vadd.f32 %v1250_v24, %v4475_v32 }
 0x3a7   :  { %v1179_v9 = vmul.f32 1.442695, %v1123_v8  ;;  %v1124_v63 = vmin.f32 %v1092_v47, 15.0  ;;  %v1038_v5 = vpop.f32.mrb[84].mxu0 }
 0x3a8   :  { %v4529_v53 = vadd.f32 %v1038_v5, %v4295_v26  ;;  %v1040_v58 = vpop.f32.mrb[85].mxu0  ;;  %2625 = vrot.lane.b32.xlu1 %v3494_v0, %s3818_s6  ;;  %v1283_v23 = vadd.f32 %v1251_v50, %v4481_v19 }
 0x3a9   :  { %3499 = vpow2.f32 %v1179_v9  ;;  %v1181_v57 = vmul.f32 1.442695, %v1124_v63  ;;  %v1041_v60 = vadd.f32 %v1040_v58, %v4297_v49  ;;  %v1042_v1 = vpop.f32.mrb[86].mxu0 }
 0x3aa   :  { %v4535_v27 = vadd.f32 %v1042_v1, %v4295_v26  ;;  %v1044_v32 = vpop.f32.mrb[87].mxu0  ;;  %2507 = vrot.lane.b32.xlu0 %v4529_v53, %s3811_s25  ;;  %v1320_v48 = vpack.c.bf16 %v1283_v23, %v1282_v6 }
 0x3ab   :  { %v3496_v51 = vpop.eup %3495  ;;  %3501 = vpow2.f32 %v1181_v57  ;;  %v1093_v56 = vmax.f32 %v1041_v60, -4.0  ;;  %v1045_v37 = vadd.f32 %v1044_v32, %v4297_v49 }
 0x3ac   :  { %2509 = vrot.lane.b32.xlu1 %v4535_v27, %s3811_s25  ;;  %3176 = vmatprep.mubr.bf16.mxu1 %v1320_v48  ;;  %v1252_v19 = vmul.f32 %v3496_v51, %v4077_v28 }
 0x3ad   :  { %v3498_v25 = vpop.eup %3497  ;;  %v1125_v21 = vmin.f32 %v1093_v56, 15.0  ;;  %v1094_v31 = vmax.f32 %v1045_v37, -4.0  ;;  %v3435_v56 = vld [vmem:[#allocation13] sm:$0xff]  }
 0x3ae   :  { %2627 = vrot.lane.b32.xlu0 %v3496_v51, %s3818_s6  ;;  %v1253_v18 = vmul.f32 %v3498_v25, %v4082_v29  ;;  %v1284_v59 = vadd.f32 %v1252_v19, %v4493_v46  ;;  %3236 = vmatprep.subr.bf16.mxu0 %v3435_v56 }
 0x3af   :  { %v1183_v20 = vmul.f32 1.442695, %v1125_v21  ;;  %v1126_v36 = vmin.f32 %v1094_v31, 15.0  ;;  %v1048_v30 = vpop.f32.mrb[88].mxu0  ;;  %3237 = vmatpush3.bf16.msra.mxu0 %v3435_v56 }
 0x3b0   :  { %v4547_v2 = vadd.f32 %v1048_v30, %v4295_v26  ;;  %v1050_v16 = vpop.f32.mrb[89].mxu0  ;;  %2629 = vrot.lane.b32.xlu1 %v3498_v25, %s3818_s6  ;;  %v1285_v28 = vadd.f32 %v1253_v18, %v4499_v17 }
 0x3b1   :  { %3503 = vpow2.f32 %v1183_v20  ;;  %v1185_v24 = vmul.f32 1.442695, %v1126_v36  ;;  %v1051_v0 = vadd.f32 %v1050_v16, %v4297_v49  ;;  %v1052_v8 = vpop.f32.mrb[90].mxu0 }
 0x3b2   :  { %v4553_v29 = vadd.f32 %v1052_v8, %v4295_v26  ;;  %v1054_v46 = vpop.f32.mrb[91].mxu0  ;;  %2511 = vrot.lane.b32.xlu0 %v4547_v2, %s3811_s25  ;;  %v1321_v47 = vpack.c.bf16 %v1285_v28, %v1284_v59 }
 0x3b3   :  { %v3500_v50 = vpop.eup %3499  ;;  %3505 = vpow2.f32 %v1185_v24  ;;  %v1095_v6 = vmax.f32 %v1051_v0, -4.0  ;;  %v1055_v9 = vadd.f32 %v1054_v46, %v4297_v49  ;;  %v3436_v0 = vld [vmem:[#allocation13 + $0x8] sm:$0xff]   ;;  %v3437_v46 = vld [vmem:[#allocation13 + $0x10] sm:$0xff]  }
 0x3b4   :  { %2513 = vrot.lane.b32.xlu1 %v4553_v29, %s3811_s25  ;;  %3177 = vmatmul.mubr.bf16.gmra.mrb[52].mxu1 %v1321_v47  ;;  %v1254_v17 = vmul.f32 %v3500_v50, %v4093_v34 }
 0x3b5   :  { %v3502_v63 = vpop.eup %3501  ;;  %v1127_v5 = vmin.f32 %v1095_v6, 15.0  ;;  %v1096_v58 = vmax.f32 %v1055_v9, -4.0  ;;  %3238 = vmatprep.subr.bf16.mxu0 %v3436_v0 }
 0x3b6   :  { %2631 = vrot.lane.b32.xlu0 %v3500_v50, %s3818_s6  ;;  %v1255_v23 = vmul.f32 %v3502_v63, %v4098_v35  ;;  %v1286_v57 = vadd.f32 %v1254_v17, %v4511_v52  ;;  %3239 = vmatpush3.bf16.msra.mxu0 %v3436_v0  ;;  %v3439_v17 = vld [vmem:[#allocation13 + $0x20] sm:$0xff]  }
 0x3b7   :  { %v1187_v60 = vmul.f32 1.442695, %v1127_v5  ;;  %v1128_v1 = vmin.f32 %v1096_v58, 15.0  ;;  %v1058_v32 = vpop.f32.mrb[92].mxu0  ;;  %3240 = vmatprep.subr.bf16.mxu0 %v3437_v46  ;;  %v3440_v58 = vld [vmem:[#allocation13 + $0x28] sm:$0xff]  }
 0x3b8   :  { %v4565_v48 = vadd.f32 %v1058_v32, %v4295_v26  ;;  %v1060_v51 = vpop.f32.mrb[93].mxu0  ;;  %2633 = vrot.lane.b32.xlu1 %v3502_v63, %s3818_s6  ;;  %v1287_v34 = vadd.f32 %v1255_v23, %v4517_v22 }
 0x3b9   :  { %3507 = vpow2.f32 %v1187_v60  ;;  %v1189_v37 = vmul.f32 1.442695, %v1128_v1  ;;  %v1061_v19 = vadd.f32 %v1060_v51, %v4297_v49  ;;  %v1062_v25 = vpop.f32.mrb[94].mxu0  ;;  %v3442_v1 = vld [vmem:[#allocation13 + $0x38] sm:$0xff]  }
 0x3ba   :  { %v1063_v35 = vadd.f32 %v1062_v25, %v4295_v26  ;;  %v1064_v52 = vpop.f32.mrb[95].mxu0  ;;  %2515 = vrot.lane.b32.xlu0 %v4565_v48, %s3811_s25  ;;  %v1322_v21 = vpack.c.bf16 %v1287_v34, %v1286_v57  ;;  %3241 = vmatpush3.bf16.msra.mxu0 %v3437_v46  ;;  %v3441_v57 = vld [vmem:[#allocation13 + $0x30] sm:$0xff]  }
 0x3bb   :  { %v3504_v31 = vpop.eup %3503  ;;  %3509 = vpow2.f32 %v1189_v37  ;;  %v1097_v18 = vmax.f32 %v1061_v19, -4.0  ;;  %v1065_v59 = vadd.f32 %v1064_v52, %v4297_v49 }
 0x3bc   :  { %2517 = vrot.lane.b32.xlu1 %v1063_v35, %s3811_s25  ;;  %3180 = vmatprep.mubr.bf16.mxu1 %v1322_v21  ;;  %v1256_v22 = vmul.f32 %v3504_v31, %v4107_v38 }
 0x3bd   :  { %v3506_v20 = vpop.eup %3505  ;;  %v1129_v36 = vmin.f32 %v1097_v18, 15.0  ;;  %v1098_v26 = vmax.f32 %v1065_v59, -4.0 }
 0x3be   :  { %2635 = vrot.lane.b32.xlu0 %v3504_v31, %s3818_s6  ;;  %v1257_v30 = vmul.f32 %v3506_v20, %v4112_v39  ;;  %v1288_v16 = vadd.f32 %v1256_v22, %v4529_v53  ;;  %v3438_v53 = vld [vmem:[#allocation13 + $0x18] sm:$0xff]  }
 0x3bf   :  { %v1191_v28 = vmul.f32 1.442695, %v1129_v36  ;;  %v1130_v24 = vmin.f32 %v1098_v26, 15.0  ;;  %3242 = vmatprep.subr.bf16.mxu0 %v3438_v53 }
 0x3c0   :  { %2637 = vrot.lane.b32.xlu1 %v3506_v20, %s3818_s6  ;;  %v1289_v49 = vadd.f32 %v1257_v30, %v4535_v27  ;;  %3243 = vmatpush3.bf16.msra.mxu0 %v3438_v53 }
 0x3c1   :  { %3511 = vpow2.f32 %v1191_v28  ;;  %v1193_v8 = vmul.f32 1.442695, %v1130_v24  ;;  %3244 = vmatprep.subr.bf16.mxu0 %v3439_v17 }
 0x3c2   :  { %v1323_v38 = vpack.c.bf16 %v1289_v49, %v1288_v16 }
 0x3c3   :  { %v3508_v47 = vpop.eup %3507  ;;  %3513 = vpow2.f32 %v1193_v8 }
 0x3c4   :  { %2639 = vrot.lane.b32.xlu0 %v3508_v47, %s3818_s6  ;;  %3181 = vmatmul.mubr.bf16.gmra.mrb[56].mxu1 %v1323_v38  ;;  %v1258_v39 = vmul.f32 %v3508_v47, %v4117_v40 }
 0x3c5   :  { %v3510_v50 = vpop.eup %3509  ;;  %3245 = vmatpush3.bf16.msra.mxu0 %v3439_v17 }
 0x3c6   :  { %2641 = vrot.lane.b32.xlu1 %v3510_v50, %s3818_s6  ;;  %v1259_v27 = vmul.f32 %v3510_v50, %v4122_v42  ;;  %v1290_v6 = vadd.f32 %v1258_v39, %v4547_v2  ;;  %3246 = vmatprep.subr.bf16.mxu0 %v3440_v58 }
 0x3c8   :  { %v1291_v9 = vadd.f32 %v1259_v27, %v4553_v29 }
 0x3c9   :  { %3247 = vmatpush3.bf16.msra.mxu0 %v3440_v58 }
 0x3ca   :  { %v1324_v63 = vpack.c.bf16 %v1291_v9, %v1290_v6  ;;  %3248 = vmatprep.subr.bf16.mxu0 %v3441_v57 }
 0x3cb   :  { %v3512_v5 = vpop.eup %3511 }
 0x3cc   :  { %2643 = vrot.lane.b32.xlu0 %v3512_v5, %s3818_s6  ;;  %3184 = vmatprep.mubr.bf16.mxu1 %v1324_v63  ;;  %v1260_v40 = vmul.f32 %v3512_v5, %v4127_v43  ;;  %v3444_v43 = vld [vmem:[#allocation14 + $0x8] sm:$0xff]  }
 0x3cd   :  { %v3514_v23 = vpop.eup %3513  ;;  %3249 = vmatpush3.bf16.msra.mxu0 %v3441_v57 }
 0x3ce   :  { %2645 = vrot.lane.b32.xlu1 %v3514_v23, %s3818_s6  ;;  %v1261_v42 = vmul.f32 %v3514_v23, %v4132_v44  ;;  %v1292_v2 = vadd.f32 %v1260_v40, %v4565_v48  ;;  %3250 = vmatprep.subr.bf16.mxu0 %v3442_v1  ;;  %v3445_v44 = vld [vmem:[#allocation14 + $0x10] sm:$0xff]  }
 0x3d0   :  { %v1293_v29 = vadd.f32 %v1261_v42, %v1063_v35 }
 0x3d1   :  { %3251 = vmatpush3.bf16.msra.mxu0 %v3442_v1 }
 0x3d2   :  { %v1325_v60 = vpack.c.bf16 %v1293_v29, %v1292_v2 }
 0x3d4   :  { %3185 = vmatmul.mubr.bf16.gmra.mrb[60].mxu1 %v1325_v60 }
 0x3d5   :  { %3204 = vmatprep.mubr.bf16.mxu1 %v4015_v7  ;;  %v3443_v7 = vld [vmem:[#allocation14] sm:$0xff]  }
 0x3d6   :  { %3284 = vmatprep.subr.bf16.mxu1 %v3443_v7 }
 0x3dc   :  { %3205 = vmatmul.mubr.bf16.vlgmr.msra.gmra.mrb[32].mxu1 %v4134_v54  ;;  %v3446_v54 = vld [vmem:[#allocation14 + $0x18] sm:$0xff]  }
 0x3dd   :  { %3208 = vmatprep.mubr.bf16.mxu1 %v4136_v55  ;;  %3285 = vmatpush3.bf16.msra.mxu1 %v3443_v7  ;;  %v3447_v55 = vld [vmem:[#allocation14 + $0x20] sm:$0xff]  }
 0x3de   :  { %3286 = vmatprep.subr.bf16.mxu1 %v3444_v43 }
 0x3e1   :  { %3287 = vmatpush3.bf16.msra.mxu1 %v3444_v43 }
 0x3e2   :  { %3288 = vmatprep.subr.bf16.mxu1 %v3445_v44 }
 0x3e4   :  { %3209 = vmatmul.mubr.bf16.gmra.mrb[36].mxu1 %v4140_v61  ;;  %v3448_v61 = vld [vmem:[#allocation14 + $0x28] sm:$0xff]  }
 0x3e5   :  { %3212 = vmatprep.mubr.bf16.mxu1 %v4142_v62  ;;  %3289 = vmatpush3.bf16.msra.mxu1 %v3445_v44  ;;  %v3449_v62 = vld [vmem:[#allocation14 + $0x30] sm:$0xff]  }
 0x3e6   :  { %3290 = vmatprep.subr.bf16.mxu1 %v3446_v54 }
 0x3e9   :  { %3291 = vmatpush3.bf16.msra.mxu1 %v3446_v54 }
 0x3ea   :  { %3292 = vmatprep.subr.bf16.mxu1 %v3447_v55 }
 0x3ec   :  { %3213 = vmatmul.mubr.bf16.gmra.mrb[40].mxu1 %v4146_v3  ;;  %v4611_v3 = vld [vmem:[%s5004_s9] ss:$0 sm:$0xff] }
 0x3ed   :  { %3216 = vmatprep.mubr.bf16.mxu1 %v4148_v4  ;;  %3293 = vmatpush3.bf16.msra.mxu1 %v3447_v55 }
 0x3ee   :  { %3294 = vmatprep.subr.bf16.mxu1 %v3448_v61 }
 0x3f1   :  { %3295 = vmatpush3.bf16.msra.mxu1 %v3448_v61 }
 0x3f2   :  { %3296 = vmatprep.subr.bf16.mxu1 %v3449_v62 }
 0x3f4   :  { %3217 = vmatmul.mubr.bf16.gmra.mrb[44].mxu1 %v4152_v12 }
 0x3f5   :  { %3220 = vmatprep.mubr.bf16.mxu1 %v4156_v33  ;;  %3297 = vmatpush3.bf16.msra.mxu1 %v3449_v62 }
 0x3fc   :  { %3221 = vmatmul.mubr.bf16.gmra.mrb[48].mxu1 %v4162_v41 }
 0x3fd   :  { %3224 = vmatprep.mubr.bf16.mxu1 %v4166_v45 }
 0x404   :  { %3225 = vmatmul.mubr.bf16.gmra.mrb[52].mxu1 %v4172_v10 }
 0x405   :  { %3228 = vmatprep.mubr.bf16.mxu1 %v4176_v11 }
 0x40c   :  { %3229 = vmatmul.mubr.bf16.gmra.mrb[56].mxu1 %v4182_v13 }
 0x40d   :  { %3232 = vmatprep.mubr.bf16.mxu1 %v4186_v14 }
 0x414   :  { %3233 = vmatmul.mubr.bf16.gmra.mrb[60].mxu1 %v4192_v15 }
 0x4af   :  { %v3206_v4 = vpop.f32.mrb[32].mxu1 }
 0x4b0   :  { %v1769_v12 = vadd.f32 %v3206_v4, %v4611_v3  ;;  %v1633_v33 = vpop.f32.mrb[33].mxu1 }
 0x4b1   :  { %v1767_v41 = vadd.f32 %v4611_v3, %v1633_v33  ;;  %v3207_v45 = vpop.f32.mrb[34].mxu1 }
 0x4b2   :  { %v1770_v10 = vadd.f32 %v3207_v45, %v4611_v3  ;;  %v1636_v11 = vpop.f32.mrb[35].mxu1  ;;  %v1801_v14 = vmax.f32 %v1769_v12, 0.0 }
 0x4b3   :  { %v1768_v13 = vadd.f32 %v4611_v3, %v1636_v11  ;;  %v1799_v32 = vmax.f32 %v1767_v41, 0.0 }
 0x4b4   :  { %v1802_v15 = vmax.f32 %v1770_v10, 0.0 }
 0x4b5   :  { %v1800_v48 = vmax.f32 %v1768_v13, 0.0 }
 0x4b6   :  { %v1832_v51 = vpack.c.bf16 %v1802_v15, %v1801_v14 }
 0x4b7   :  { %v1831_v34 = vpack.c.bf16 %v1800_v48, %v1799_v32  ;;  %v3210_v56 = vpop.f32.mrb[36].mxu1 }
 0x4b8   :  { %v1773_v37 = vadd.f32 %v3210_v56, %v4611_v3  ;;  %v1649_v19 = vpop.f32.mrb[37].mxu1 }
 0x4b9   :  { %v1771_v25 = vadd.f32 %v4611_v3, %v1649_v19  ;;  %v3211_v35 = vpop.f32.mrb[38].mxu1  ;;  %3252 = vmatprep.mubr.bf16.mxu0 %v1831_v34 }
 0x4ba   :  { %v1774_v52 = vadd.f32 %v3211_v35, %v4611_v3  ;;  %v1652_v21 = vpop.f32.mrb[39].mxu1  ;;  %3253 = vmatmul.mubr.bf16.vlgmr.msra.gmra.mrb[96].mxu0 %v1832_v51  ;;  %v1805_v18 = vmax.f32 %v1773_v37, 0.0 }
 0x4bb   :  { %v1772_v31 = vadd.f32 %v4611_v3, %v1652_v21  ;;  %v1803_v22 = vmax.f32 %v1771_v25, 0.0 }
 0x4bc   :  { %v1806_v59 = vmax.f32 %v1774_v52, 0.0 }
 0x4bd   :  { %v1804_v20 = vmax.f32 %v1772_v31, 0.0 }
 0x4be   :  { %v1834_v36 = vpack.c.bf16 %v1806_v59, %v1805_v18 }
 0x4bf   :  { %v1833_v26 = vpack.c.bf16 %v1804_v20, %v1803_v22  ;;  %v3214_v30 = vpop.f32.mrb[40].mxu1 }
 0x4c0   :  { %v1777_v16 = vadd.f32 %v3214_v30, %v4611_v3  ;;  %v1665_v28 = vpop.f32.mrb[41].mxu1 }
 0x4c1   :  { %v1775_v24 = vadd.f32 %v4611_v3, %v1665_v28  ;;  %v3215_v49 = vpop.f32.mrb[42].mxu1  ;;  %3256 = vmatprep.mubr.bf16.mxu0 %v1833_v26 }
 0x4c2   :  { %v1778_v0 = vadd.f32 %v3215_v49, %v4611_v3  ;;  %v1668_v8 = vpop.f32.mrb[43].mxu1  ;;  %3257 = vmatmul.mubr.bf16.gmra.mrb[100].mxu0 %v1834_v36  ;;  %v1809_v38 = vmax.f32 %v1777_v16, 0.0 }
 0x4c3   :  { %v1776_v46 = vadd.f32 %v4611_v3, %v1668_v8  ;;  %v1807_v39 = vmax.f32 %v1775_v24, 0.0 }
 0x4c4   :  { %v1810_v47 = vmax.f32 %v1778_v0, 0.0 }
 0x4c5   :  { %v1808_v53 = vmax.f32 %v1776_v46, 0.0 }
 0x4c6   :  { %v1836_v50 = vpack.c.bf16 %v1810_v47, %v1809_v38 }
 0x4c7   :  { %v1835_v27 = vpack.c.bf16 %v1808_v53, %v1807_v39  ;;  %v3218_v6 = vpop.f32.mrb[44].mxu1 }
 0x4c8   :  { %v1781_v9 = vadd.f32 %v3218_v6, %v4611_v3  ;;  %v1681_v17 = vpop.f32.mrb[45].mxu1 }
 0x4c9   :  { %v1779_v63 = vadd.f32 %v4611_v3, %v1681_v17  ;;  %v3219_v5 = vpop.f32.mrb[46].mxu1  ;;  %3260 = vmatprep.mubr.bf16.mxu0 %v1835_v27 }
 0x4ca   :  { %v1782_v40 = vadd.f32 %v3219_v5, %v4611_v3  ;;  %v1684_v58 = vpop.f32.mrb[47].mxu1  ;;  %3261 = vmatmul.mubr.bf16.gmra.mrb[104].mxu0 %v1836_v50  ;;  %v1813_v42 = vmax.f32 %v1781_v9, 0.0 }
 0x4cb   :  { %v1780_v23 = vadd.f32 %v4611_v3, %v1684_v58  ;;  %v1811_v29 = vmax.f32 %v1779_v63, 0.0 }
 0x4cc   :  { %v1814_v2 = vmax.f32 %v1782_v40, 0.0 }
 0x4cd   :  { %v1812_v57 = vmax.f32 %v1780_v23, 0.0  ;;  %v3450_v23 = vld [vmem:[#allocation14 + $0x38] sm:$0xff]  }
 0x4ce   :  { %v1838_v60 = vpack.c.bf16 %v1814_v2, %v1813_v42  ;;  %3298 = vmatprep.subr.bf16.mxu1 %v3450_v23  ;;  %v4648_v42 = vld [vmem:[%s5006_s11] ss:$0 sm:$0xff] }
 0x4cf   :  { %v1837_v1 = vpack.c.bf16 %v1812_v57, %v1811_v29  ;;  %v3222_v7 = vpop.f32.mrb[48].mxu1  ;;  %3299 = vmatpush3.bf16.msra.mxu1 %v3450_v23 }
 0x4d0   :  { %v1785_v43 = vadd.f32 %v3222_v7, %v4611_v3  ;;  %v1697_v44 = vpop.f32.mrb[49].mxu1 }
 0x4d1   :  { %v1783_v54 = vadd.f32 %v4611_v3, %v1697_v44  ;;  %v3223_v55 = vpop.f32.mrb[50].mxu1  ;;  %3264 = vmatprep.mubr.bf16.mxu0 %v1837_v1 }
 0x4d2   :  { %v1786_v61 = vadd.f32 %v3223_v55, %v4611_v3  ;;  %v1700_v62 = vpop.f32.mrb[51].mxu1  ;;  %3265 = vmatmul.mubr.bf16.gmra.mrb[108].mxu0 %v1838_v60  ;;  %v1817_v12 = vmax.f32 %v1785_v43, 0.0 }
 0x4d3   :  { %v1784_v4 = vadd.f32 %v4611_v3, %v1700_v62  ;;  %v1815_v41 = vmax.f32 %v1783_v54, 0.0 }
 0x4d4   :  { %v1818_v33 = vmax.f32 %v1786_v61, 0.0 }
 0x4d5   :  { %v1816_v45 = vmax.f32 %v1784_v4, 0.0 }
 0x4d6   :  { %v1840_v10 = vpack.c.bf16 %v1818_v33, %v1817_v12 }
 0x4d7   :  { %v1839_v11 = vpack.c.bf16 %v1816_v45, %v1815_v41  ;;  %v3226_v13 = vpop.f32.mrb[52].mxu1 }
 0x4d8   :  { %v1789_v14 = vadd.f32 %v3226_v13, %v4611_v3  ;;  %v1713_v15 = vpop.f32.mrb[53].mxu1 }
 0x4d9   :  { %v1787_v32 = vadd.f32 %v4611_v3, %v1713_v15  ;;  %v3227_v48 = vpop.f32.mrb[54].mxu1  ;;  %3268 = vmatprep.mubr.bf16.mxu0 %v1839_v11 }
 0x4da   :  { %v1790_v51 = vadd.f32 %v3227_v48, %v4611_v3  ;;  %v1716_v34 = vpop.f32.mrb[55].mxu1  ;;  %3269 = vmatmul.mubr.bf16.gmra.mrb[112].mxu0 %v1840_v10  ;;  %v1821_v37 = vmax.f32 %v1789_v14, 0.0 }
 0x4db   :  { %v1788_v56 = vadd.f32 %v4611_v3, %v1716_v34  ;;  %v1819_v25 = vmax.f32 %v1787_v32, 0.0 }
 0x4dc   :  { %v1822_v19 = vmax.f32 %v1790_v51, 0.0 }
 0x4dd   :  { %v1820_v35 = vmax.f32 %v1788_v56, 0.0 }
 0x4de   :  { %v1842_v52 = vpack.c.bf16 %v1822_v19, %v1821_v37 }
 0x4df   :  { %v1841_v21 = vpack.c.bf16 %v1820_v35, %v1819_v25  ;;  %v3230_v31 = vpop.f32.mrb[56].mxu1 }
 0x4e0   :  { %v1793_v18 = vadd.f32 %v3230_v31, %v4611_v3  ;;  %v1729_v59 = vpop.f32.mrb[57].mxu1 }
 0x4e1   :  { %v1791_v22 = vadd.f32 %v4611_v3, %v1729_v59  ;;  %v3231_v20 = vpop.f32.mrb[58].mxu1  ;;  %3272 = vmatprep.mubr.bf16.mxu0 %v1841_v21 }
 0x4e2   :  { %v1794_v36 = vadd.f32 %v3231_v20, %v4611_v3  ;;  %v1732_v26 = vpop.f32.mrb[59].mxu1  ;;  %3273 = vmatmul.mubr.bf16.gmra.mrb[116].mxu0 %v1842_v52  ;;  %v1825_v16 = vmax.f32 %v1793_v18, 0.0 }
 0x4e3   :  { %v1792_v30 = vadd.f32 %v4611_v3, %v1732_v26  ;;  %v1823_v24 = vmax.f32 %v1791_v22, 0.0 }
 0x4e4   :  { %v1826_v28 = vmax.f32 %v1794_v36, 0.0 }
 0x4e5   :  { %v1824_v49 = vmax.f32 %v1792_v30, 0.0 }
 0x4e6   :  { %v1844_v0 = vpack.c.bf16 %v1826_v28, %v1825_v16 }
 0x4e7   :  { %v1843_v8 = vpack.c.bf16 %v1824_v49, %v1823_v24  ;;  %v3234_v46 = vpop.f32.mrb[60].mxu1 }
 0x4e8   :  { %v1797_v38 = vadd.f32 %v3234_v46, %v4611_v3  ;;  %v1745_v47 = vpop.f32.mrb[61].mxu1 }
 0x4e9   :  { %v1795_v39 = vadd.f32 %v4611_v3, %v1745_v47  ;;  %v3235_v53 = vpop.f32.mrb[62].mxu1  ;;  %3276 = vmatprep.mubr.bf16.mxu0 %v1843_v8 }
 0x4ea   :  { %v1798_v50 = vadd.f32 %v3235_v53, %v4611_v3  ;;  %v1748_v27 = vpop.f32.mrb[63].mxu1  ;;  %3277 = vmatmul.mubr.bf16.gmra.mrb[120].mxu0 %v1844_v0  ;;  %v1829_v9 = vmax.f32 %v1797_v38, 0.0 }
 0x4eb   :  { %v1796_v6 = vadd.f32 %v4611_v3, %v1748_v27  ;;  %v1827_v63 = vmax.f32 %v1795_v39, 0.0 }
 0x4ec   :  { %v1830_v17 = vmax.f32 %v1798_v50, 0.0 }
 0x4ed   :  { %v1828_v5 = vmax.f32 %v1796_v6, 0.0 }
 0x4ee   :  { %v1846_v40 = vpack.c.bf16 %v1830_v17, %v1829_v9 }
 0x4ef   :  { %v1845_v58 = vpack.c.bf16 %v1828_v5, %v1827_v63 }
 0x4f1   :  { %3280 = vmatprep.mubr.bf16.mxu0 %v1845_v58 }
 0x4f2   :  { %3281 = vmatmul.mubr.bf16.gmra.mrb[124].mxu0 %v1846_v40 }
 0x58d   :  { %v3254_v2 = vpop.f32.mrb[96].mxu0 }
 0x58e   :  { %v1961_v29 = vadd.f32 %v3254_v2, %v4648_v42  ;;  %v1952_v3 = vpop.f32.mrb[97].mxu0 }
 0x58f   :  { %v1953_v57 = vadd.f32 %v4648_v42, %v1952_v3  ;;  %v3255_v60 = vpop.f32.mrb[98].mxu0 }
 0x590   :  { %v1964_v1 = vadd.f32 %v3255_v60, %v4648_v42  ;;  %v1955_v7 = vpop.f32.mrb[99].mxu0  ;;  %v2081_v44 = vmax.f32 %v1961_v29, 0.0 }
 0x591   :  { %v1956_v43 = vadd.f32 %v4648_v42, %v1955_v7  ;;  %v2079_v55 = vmax.f32 %v1953_v57, 0.0 }
 0x592   :  { %v2082_v54 = vmax.f32 %v1964_v1, 0.0 }
 0x593   :  { %v2080_v61 = vmax.f32 %v1956_v43, 0.0 }
 0x594   :  { %v2112_v62 = vpack.c.bf16 %v2082_v54, %v2081_v44 }
 0x595   :  { %v2111_v4 = vpack.c.bf16 %v2080_v61, %v2079_v55  ;;  %v3258_v12 = vpop.f32.mrb[100].mxu0 }
 0x596   :  { %v1977_v33 = vadd.f32 %v3258_v12, %v4648_v42  ;;  %v1968_v41 = vpop.f32.mrb[101].mxu0 }
 0x597   :  { %v1969_v45 = vadd.f32 %v4648_v42, %v1968_v41  ;;  %v3259_v10 = vpop.f32.mrb[102].mxu0  ;;  %3300 = vmatprep.mubr.bf16.mxu1 %v2111_v4 }
 0x598   :  { %v1980_v11 = vadd.f32 %v3259_v10, %v4648_v42  ;;  %v1971_v13 = vpop.f32.mrb[103].mxu0  ;;  %3301 = vmatmul.mubr.bf16.vlgmr.msra.gmra.mrb[64].mxu1 %v2112_v62  ;;  %v2085_v15 = vmax.f32 %v1977_v33, 0.0 }
 0x599   :  { %v1972_v14 = vadd.f32 %v4648_v42, %v1971_v13  ;;  %v2083_v48 = vmax.f32 %v1969_v45, 0.0 }
 0x59a   :  { %v2086_v32 = vmax.f32 %v1980_v11, 0.0 }
 0x59b   :  { %v2084_v51 = vmax.f32 %v1972_v14, 0.0 }
 0x59c   :  { %v2114_v34 = vpack.c.bf16 %v2086_v32, %v2085_v15 }
 0x59d   :  { %v2113_v56 = vpack.c.bf16 %v2084_v51, %v2083_v48  ;;  %v3262_v37 = vpop.f32.mrb[104].mxu0 }
 0x59e   :  { %v1993_v19 = vadd.f32 %v3262_v37, %v4648_v42  ;;  %v1984_v25 = vpop.f32.mrb[105].mxu0 }
 0x59f   :  { %v1985_v35 = vadd.f32 %v4648_v42, %v1984_v25  ;;  %v3263_v52 = vpop.f32.mrb[106].mxu0  ;;  %3304 = vmatprep.mubr.bf16.mxu1 %v2113_v56 }
 0x5a0   :  { %v1996_v21 = vadd.f32 %v3263_v52, %v4648_v42  ;;  %v1987_v31 = vpop.f32.mrb[107].mxu0  ;;  %3305 = vmatmul.mubr.bf16.gmra.mrb[68].mxu1 %v2114_v34  ;;  %v2089_v59 = vmax.f32 %v1993_v19, 0.0 }
 0x5a1   :  { %v1988_v18 = vadd.f32 %v4648_v42, %v1987_v31  ;;  %v2087_v20 = vmax.f32 %v1985_v35, 0.0 }
 0x5a2   :  { %v2090_v22 = vmax.f32 %v1996_v21, 0.0 }
 0x5a3   :  { %v2088_v36 = vmax.f32 %v1988_v18, 0.0 }
 0x5a4   :  { %v2116_v26 = vpack.c.bf16 %v2090_v22, %v2089_v59 }
 0x5a5   :  { %v2115_v30 = vpack.c.bf16 %v2088_v36, %v2087_v20  ;;  %v3266_v16 = vpop.f32.mrb[108].mxu0 }
 0x5a6   :  { %v2009_v28 = vadd.f32 %v3266_v16, %v4648_v42  ;;  %v2000_v24 = vpop.f32.mrb[109].mxu0 }
 0x5a7   :  { %v2001_v49 = vadd.f32 %v4648_v42, %v2000_v24  ;;  %v3267_v0 = vpop.f32.mrb[110].mxu0  ;;  %3308 = vmatprep.mubr.bf16.mxu1 %v2115_v30 }
 0x5a8   :  { %v2012_v8 = vadd.f32 %v3267_v0, %v4648_v42  ;;  %v2003_v46 = vpop.f32.mrb[111].mxu0  ;;  %3309 = vmatmul.mubr.bf16.gmra.mrb[72].mxu1 %v2116_v26  ;;  %v2093_v47 = vmax.f32 %v2009_v28, 0.0 }
 0x5a9   :  { %v2004_v38 = vadd.f32 %v4648_v42, %v2003_v46  ;;  %v2091_v53 = vmax.f32 %v2001_v49, 0.0 }
 0x5aa   :  { %v2094_v39 = vmax.f32 %v2012_v8, 0.0 }
 0x5ab   :  { %v2092_v50 = vmax.f32 %v2004_v38, 0.0  ;;  %v4682_v38 = vpop.permute.xlu0 %2455 }
 0x5ac   :  { %v2118_v27 = vpack.c.bf16 %v2094_v39, %v2093_v47  ;;  %v4684_v47 = vpop.permute.xlu1 %2459 }
 0x5ad   :  { %v2117_v6 = vpack.c.bf16 %v2092_v50, %v2091_v53  ;;  %v3270_v9 = vpop.f32.mrb[112].mxu0 }
 0x5ae   :  { %v2025_v17 = vadd.f32 %v3270_v9, %v4648_v42  ;;  %v2016_v63 = vpop.f32.mrb[113].mxu0 }
 0x5af   :  { %v2017_v5 = vadd.f32 %v4648_v42, %v2016_v63  ;;  %v3271_v40 = vpop.f32.mrb[114].mxu0  ;;  %3312 = vmatprep.mubr.bf16.mxu1 %v2117_v6  ;;  %v4686_v39 = vpop.permute.xlu0 %2457 }
 0x5b0   :  { %v2028_v58 = vadd.f32 %v3271_v40, %v4648_v42  ;;  %v2019_v23 = vpop.f32.mrb[115].mxu0  ;;  %3313 = vmatmul.mubr.bf16.gmra.mrb[76].mxu1 %v2118_v27  ;;  %v2097_v29 = vmax.f32 %v2025_v17, 0.0  ;;  %v4688_v53 = vpop.permute.xlu1 %2461 }
 0x5b1   :  { %v2020_v2 = vadd.f32 %v4648_v42, %v2019_v23  ;;  %v2095_v57 = vmax.f32 %v2017_v5, 0.0 }
 0x5b2   :  { %v2098_v3 = vmax.f32 %v2028_v58, 0.0 }
 0x5b3   :  { %v2096_v60 = vmax.f32 %v2020_v2, 0.0  ;;  %v4690_v50 = vpop.permute.xlu0 %2463 }
 0x5b4   :  { %v2120_v1 = vpack.c.bf16 %v2098_v3, %v2097_v29  ;;  %v4692_v27 = vpop.permute.xlu1 %2465 }
 0x5b5   :  { %v2119_v7 = vpack.c.bf16 %v2096_v60, %v2095_v57  ;;  %v3274_v43 = vpop.f32.mrb[116].mxu0 }
 0x5b6   :  { %v2041_v44 = vadd.f32 %v3274_v43, %v4648_v42  ;;  %v2032_v54 = vpop.f32.mrb[117].mxu0 }
 0x5b7   :  { %v2033_v55 = vadd.f32 %v4648_v42, %v2032_v54  ;;  %v3275_v61 = vpop.f32.mrb[118].mxu0  ;;  %3316 = vmatprep.mubr.bf16.mxu1 %v2119_v7 }
 0x5b8   :  { %v2044_v62 = vadd.f32 %v3275_v61, %v4648_v42  ;;  %v2035_v4 = vpop.f32.mrb[119].mxu0  ;;  %3317 = vmatmul.mubr.bf16.gmra.mrb[80].mxu1 %v2120_v1  ;;  %v2101_v33 = vmax.f32 %v2041_v44, 0.0  ;;  %v4696_v6 = vpop.permute.xlu1 %2585 }
 0x5b9   :  { %v2036_v12 = vadd.f32 %v4648_v42, %v2035_v4  ;;  %v2099_v45 = vmax.f32 %v2033_v55, 0.0 }
 0x5ba   :  { %v2102_v41 = vmax.f32 %v2044_v62, 0.0 }
 0x5bb   :  { %v2100_v10 = vmax.f32 %v2036_v12, 0.0 }
 0x5bc   :  { %v2122_v11 = vpack.c.bf16 %v2102_v41, %v2101_v33  ;;  %v4700_v17 = vpop.permute.xlu1 %2469 }
 0x5bd   :  { %v2121_v13 = vpack.c.bf16 %v2100_v10, %v2099_v45  ;;  %v3278_v14 = vpop.f32.mrb[120].mxu0 }
 0x5be   :  { %v2057_v15 = vadd.f32 %v3278_v14, %v4648_v42  ;;  %v2048_v32 = vpop.f32.mrb[121].mxu0 }
 0x5bf   :  { %v2049_v48 = vadd.f32 %v4648_v42, %v2048_v32  ;;  %v3279_v51 = vpop.f32.mrb[122].mxu0  ;;  %3320 = vmatprep.mubr.bf16.mxu1 %v2121_v13 }
 0x5c0   :  { %v2060_v34 = vadd.f32 %v3279_v51, %v4648_v42  ;;  %v2051_v56 = vpop.f32.mrb[123].mxu0  ;;  %3321 = vmatmul.mubr.bf16.gmra.mrb[84].mxu1 %v2122_v11  ;;  %v2105_v19 = vmax.f32 %v2057_v15, 0.0  ;;  %v4704_v5 = vpop.permute.xlu1 %2589  ;;  %v4759_v15 = vld [vmem:[%s5008_s13] ss:$0 sm:$0xff]  ;;  %s3819_s13 = smov [#allocation16]  }
 0x5c1   :  { %v2052_v37 = vadd.f32 %v4648_v42, %v2051_v56  ;;  %v2103_v35 = vmax.f32 %v2049_v48, 0.0  ;;  %s2815_s7 = sshll.u32 %s3819_s13, 4  ;;  %s2816_s7 = int_to_ptr.vmem [resolvable:$true] %s2815_s7 }
 0x5c2   :  { %v2106_v25 = vmax.f32 %v2060_v34, 0.0  ;;  %s3771_s22 = scalar_lea.vmem %s2816_s7, 4096  ;;  %p3776_p9 = scmp.lt.s32.totalorder %s2816_s7, %s2816_s7 }
 0x5c3   :  { %v2104_v52 = vmax.f32 %v2052_v37, 0.0  ;;  %p3772_p8 = scmp.ne.s32.totalorder %s2816_s7, %s3771_s22  ;;  %p3777_p10 = scmp.lt.s32.totalorder %s3771_s22, %s3771_s22 }
 0x5c4   :  { %v2124_v21 = vpack.c.bf16 %v2106_v25, %v2105_v19  ;;  %v4708_v58 = vpop.permute.xlu1 %2473 }
 0x5c5   :  { %v2123_v31 = vpack.c.bf16 %v2104_v52, %v2103_v35  ;;  %v3282_v18 = vpop.f32.mrb[124].mxu0  ;;  %p3778_p11 = por %p3777_p10, %p3776_p9 }
 0x5c6   :  { %v2073_v59 = vadd.f32 %v3282_v18, %v4648_v42  ;;  %v2064_v22 = vpop.f32.mrb[125].mxu0 }
 0x5c7   :  { %v2065_v20 = vadd.f32 %v4648_v42, %v2064_v22  ;;  %v3283_v36 = vpop.f32.mrb[126].mxu0  ;;  %3324 = vmatprep.mubr.bf16.mxu1 %v2123_v31  ;;  %p3779_p12 = pnand %p3778_p11, %p3772_p8 }
 0x5c8   :  { %v2076_v26 = vadd.f32 %v3283_v36, %v4648_v42  ;;  %v2067_v30 = vpop.f32.mrb[127].mxu0  ;;  %3325 = vmatmul.mubr.bf16.gmra.mrb[88].mxu1 %v2124_v21  ;;  %v2109_v28 = vmax.f32 %v2073_v59, 0.0  ;;  %v4712_v2 = vpop.permute.xlu1 %2593 }
 0x5c9   :  { %v2068_v16 = vadd.f32 %v4648_v42, %v2067_v30  ;;  %v2107_v49 = vmax.f32 %v2065_v20, 0.0  ;;  %v4694_v42 = vpop.permute.xlu0 %2583 }
 0x5ca   :  { %v2110_v24 = vmax.f32 %v2076_v26, 0.0 }
 0x5cb   :  { %v2108_v0 = vmax.f32 %v2068_v16, 0.0 }
 0x5cc   :  { %v2126_v8 = vpack.c.bf16 %v2110_v24, %v2109_v28  ;;  %v4716_v3 = vpop.permute.xlu1 %2477 }
 0x5cd   :  { %v2125_v46 = vpack.c.bf16 %v2108_v0, %v2107_v49  ;;  %v4698_v9 = vpop.permute.xlu0 %2467 }
 0x5cf   :  { %3328 = vmatprep.mubr.bf16.mxu1 %v2125_v46 }
 0x5d0   :  { %3329 = vmatmul.mubr.bf16.gmra.mrb[92].mxu1 %v2126_v8  ;;  %v4720_v60 = vpop.permute.xlu1 %2597 }
 0x5d1   :  { %v4702_v63 = vpop.permute.xlu0 %2587 }
 0x5d4   :  { %v4724_v7 = vpop.permute.xlu1 %2481 }
 0x5d5   :  { %v4706_v40 = vpop.permute.xlu0 %2471 }
 0x5d8   :  { %v4728_v44 = vpop.permute.xlu1 %2601 }
 0x5d9   :  { %v4710_v23 = vpop.permute.xlu0 %2591 }
 0x5dc   :  { %v4732_v55 = vpop.permute.xlu1 %2485 }
 0x5dd   :  { %v4714_v29 = vpop.permute.xlu0 %2475 }
 0x5e0   :  { %v4736_v62 = vpop.permute.xlu1 %2605 }
 0x5e1   :  { %v4718_v57 = vpop.permute.xlu0 %2595 }
 0x5e4   :  { %v4740_v12 = vpop.permute.xlu1 %2489 }
 0x5e5   :  { %v4722_v1 = vpop.permute.xlu0 %2479 }
 0x5e8   :  { %v4744_v41 = vpop.permute.xlu1 %2609 }
 0x5e9   :  { %v4726_v43 = vpop.permute.xlu0 %2599 }
 0x5ec   :  { %v4748_v10 = vpop.permute.xlu1 %2493 }
 0x5ed   :  { %v4730_v54 = vpop.permute.xlu0 %2483 }
 0x5f0   :  { %v4752_v13 = vpop.permute.xlu1 %2613 }
 0x5f1   :  { %v4734_v61 = vpop.permute.xlu0 %2603 }
 0x5f4   :  { %v4761_v48 = vpop.permute.xlu1 %2497 }
 0x5f5   :  { %v4738_v4 = vpop.permute.xlu0 %2487 }
 0x5f8   :  { %v4769_v21 = vpop.permute.xlu1 %2617 }
 0x5f9   :  { %v4742_v33 = vpop.permute.xlu0 %2607 }
 0x5fc   :  { %v4777_v24 = vpop.permute.xlu1 %2501 }
 0x5fd   :  { %v4746_v45 = vpop.permute.xlu0 %2491 }
 0x601   :  { %v4750_v11 = vpop.permute.xlu0 %2611 }
 0x605   :  { %v4754_v14 = vpop.permute.xlu0 %2495 }
 0x609   :  { %v4766_v35 = vpop.permute.xlu0 %2615 }
 0x60d   :  { %v4772_v22 = vpop.permute.xlu0 %2499 }
 0x66b   :  { %v3302_v32 = vpop.f32.mrb[64].mxu1 }
 0x66c   :  { %v2241_v51 = vadd.f32 %v3302_v32, %v4759_v15  ;;  %v2232_v34 = vpop.f32.mrb[65].mxu1 }
 0x66d   :  { %v2233_v56 = vadd.f32 %v4759_v15, %v2232_v34  ;;  %v3303_v37 = vpop.f32.mrb[66].mxu1 }
 0x66e   :  { %3515 = vtanh.f32 %v2241_v51  ;;  %v2244_v19 = vadd.f32 %v3303_v37, %v4759_v15  ;;  %v2235_v25 = vpop.f32.mrb[67].mxu1  ;;  %v4779_v51 = vpop.permute.xlu0 %2619 }
 0x66f   :  { %3517 = vtanh.f32 %v2233_v56  ;;  %v2236_v52 = vadd.f32 %v4759_v15, %v2235_v25 }
 0x670   :  { %3519 = vtanh.f32 %v2244_v19 }
 0x671   :  { %3521 = vtanh.f32 %v2236_v52 }
 0x673   :  { %v3306_v31 = vpop.f32.mrb[68].mxu1 }
 0x674   :  { %v2257_v18 = vadd.f32 %v3306_v31, %v4759_v15  ;;  %v2248_v59 = vpop.f32.mrb[69].mxu1 }
 0x675   :  { %v2249_v20 = vadd.f32 %v4759_v15, %v2248_v59  ;;  %v3307_v36 = vpop.f32.mrb[70].mxu1 }
 0x676   :  { %3523 = vtanh.f32 %v2257_v18  ;;  %v2260_v26 = vadd.f32 %v3307_v36, %v4759_v15  ;;  %v2251_v30 = vpop.f32.mrb[71].mxu1 }
 0x677   :  { %3525 = vtanh.f32 %v2249_v20  ;;  %v2252_v16 = vadd.f32 %v4759_v15, %v2251_v30  ;;  %v4794_v30 = vpop.permute.xlu1 %2621 }
 0x678   :  { %v3516_v28 = vpop.eup %3515  ;;  %3527 = vtanh.f32 %v2260_v26 }
 0x679   :  { %v3518_v49 = vpop.eup %3517  ;;  %v2393_v0 = vmul.f32 2.0, %v3516_v28  ;;  %3529 = vtanh.f32 %v2252_v16 }
 0x67a   :  { %v3520_v8 = vpop.eup %3519  ;;  %v2391_v46 = vmul.f32 2.0, %v3518_v49 }
 0x67b   :  { %v3522_v32 = vpop.eup %3521  ;;  %v2682_v34 = vsel %vm2679_vm1, %v2393_v0, %v4684_v47  ;;  %v2394_v56 = vmul.f32 2.0, %v3520_v8  ;;  %v3310_v37 = vpop.f32.mrb[72].mxu1 }
 0x67c   :  { %v2715_v19 = vsel %vm2712_vm2, %v2682_v34, %v4702_v63  ;;  %v2680_v25 = vsel %vm2679_vm1, %v2391_v46, %v4682_v38  ;;  %v2392_v52 = vmul.f32 2.0, %v3522_v32  ;;  %v2273_v31 = vadd.f32 %v3310_v37, %v4759_v15  ;;  %v2264_v18 = vpop.f32.mrb[73].mxu1  ;;  %v4807_v32 = vpop.permute.xlu0 %2503 }
 0x67d   :  { %v2748_v59 = vsel %vm2745_vm3, %v2715_v19, 0.0  ;;  %v2713_v20 = vsel %vm2712_vm2, %v2680_v25, %v4694_v42  ;;  %v2683_v47 = vsel %vm2679_vm1, %v2394_v56, %v4688_v53  ;;  %v2265_v36 = vadd.f32 %v4759_v15, %v2264_v18  ;;  %v3311_v26 = vpop.f32.mrb[74].mxu1 }
 0x67e   :  { %2780 = vst [vmem:[#allocation16 + $0x10] sm:$0xff] %v2748_v59  ;;  %v2746_v38 = vsel %vm2745_vm3, %v2713_v20, 0.0  ;;  %v2716_v63 = vsel %vm2712_vm2, %v2683_v47, %v4704_v5  ;;  %v2681_v16 = vsel %vm2679_vm1, %v2392_v52, %v4686_v39  ;;  %3531 = vtanh.f32 %v2273_v31  ;;  %v2267_v28 = vpop.f32.mrb[75].mxu1  ;;  %v4811_v52 = vpop.permute.xlu1 %2505 }
 0x67f   :  { %2778 = vst [vmem:[#allocation16] sm:$0xff] %v2746_v38  ;;  %v2749_v42 = vsel %vm2745_vm3, %v2716_v63, 0.0  ;;  %v2714_v53 = vsel %vm2712_vm2, %v2681_v16, %v4696_v6  ;;  %3533 = vtanh.f32 %v2265_v36  ;;  %v2276_v49 = vadd.f32 %v3311_v26, %v4759_v15 }
 0x680   :  { %v3524_v0 = vpop.eup %3523  ;;  %2781 = vst [vmem:[#allocation16 + $0x18] sm:$0xff] %v2749_v42  ;;  %v2747_v8 = vsel %vm2745_vm3, %v2714_v53, 0.0  ;;  %v2268_v5 = vadd.f32 %v4759_v15, %v2267_v28  ;;  %v4829_v42 = vpop.permute.xlu0 %2623 }
 0x681   :  { %v3526_v46 = vpop.eup %3525  ;;  %2779 = vst [vmem:[#allocation16 + $0x8] sm:$0xff] %v2747_v8  ;;  %v2397_v39 = vmul.f32 2.0, %v3524_v0  ;;  %3535 = vtanh.f32 %v2276_v49 }
 0x682   :  { %v3528_v34 = vpop.eup %3527  ;;  %v2395_v56 = vmul.f32 2.0, %v3526_v46  ;;  %3537 = vtanh.f32 %v2268_v5  ;;  %v4837_v5 = vpop.permute.xlu1 %2625 }
 0x683   :  { %v3530_v37 = vpop.eup %3529  ;;  %v2686_v6 = vsel %vm2679_vm1, %v2397_v39, %v4698_v9  ;;  %v2398_v19 = vmul.f32 2.0, %v3528_v34  ;;  %v3314_v25 = vpop.f32.mrb[76].mxu1 }
 0x684   :  { %v2719_v31 = vsel %vm2712_vm2, %v2686_v6, %v4718_v57  ;;  %v2684_v18 = vsel %vm2679_vm1, %v2395_v56, %v4690_v50  ;;  %v2396_v59 = vmul.f32 2.0, %v3530_v37  ;;  %v2289_v20 = vadd.f32 %v3314_v25, %v4759_v15  ;;  %v2280_v47 = vpop.f32.mrb[77].mxu1 }
 0x685   :  { %v2752_v36 = vsel %vm2745_vm3, %v2719_v31, 0.0  ;;  %v2717_v26 = vsel %vm2712_vm2, %v2684_v18, %v4710_v23  ;;  %v2687_v9 = vsel %vm2679_vm1, %v2398_v19, %v4700_v17  ;;  %v2281_v38 = vadd.f32 %v4759_v15, %v2280_v47  ;;  %v3315_v63 = vpop.f32.mrb[78].mxu1  ;;  %v4846_v18 = vpop.permute.xlu0 %2507 }
 0x686   :  { %2784 = vst [vmem:[#allocation16 + $0x30] sm:$0xff] %v2752_v36  ;;  %v2750_v57 = vsel %vm2745_vm3, %v2717_v26, 0.0  ;;  %v2720_v50 = vsel %vm2712_vm2, %v2687_v9, %v4720_v60  ;;  %v2685_v16 = vsel %vm2679_vm1, %v2396_v59, %v4692_v27  ;;  %3539 = vtanh.f32 %v2289_v20  ;;  %v2283_v28 = vpop.f32.mrb[79].mxu1 }
 0x687   :  { %2782 = vst [vmem:[#allocation16 + $0x20] sm:$0xff] %v2750_v57  ;;  %v2753_v23 = vsel %vm2745_vm3, %v2720_v50, 0.0  ;;  %v2718_v17 = vsel %vm2712_vm2, %v2685_v16, %v4712_v2  ;;  %3541 = vtanh.f32 %v2281_v38  ;;  %v2292_v53 = vadd.f32 %v3315_v63, %v4759_v15  ;;  %v4861_v50 = vpop.permute.xlu1 %2509 }
 0x688   :  { %v3532_v49 = vpop.eup %3531  ;;  %2785 = vst [vmem:[#allocation16 + $0x38] sm:$0xff] %v2753_v23  ;;  %v2751_v60 = vsel %vm2745_vm3, %v2718_v17, 0.0  ;;  %v2284_v0 = vadd.f32 %v4759_v15, %v2283_v28 }
 0x689   :  { %v3534_v27 = vpop.eup %3533  ;;  %2783 = vst [vmem:[#allocation16 + $0x28] sm:$0xff] %v2751_v60  ;;  %v2401_v8 = vmul.f32 2.0, %v3532_v49  ;;  %3543 = vtanh.f32 %v2292_v53  ;;  %v4867_v53 = vpop.permute.xlu0 %2627 }
 0x68a   :  { %v2399_v46 = vmul.f32 2.0, %v3534_v27  ;;  %3545 = vtanh.f32 %v2284_v0 }
 0x68b   :  { %v3536_v39 = vpop.eup %3535  ;;  %v2690_v2 = vsel %vm2679_vm1, %v2401_v8, %v4714_v29  ;;  %v3318_v34 = vpop.f32.mrb[80].mxu1 }
 0x68c   :  { %v3538_v56 = vpop.eup %3537  ;;  %v2723_v37 = vsel %vm2712_vm2, %v2690_v2, %v4734_v61  ;;  %v2688_v6 = vsel %vm2679_vm1, %v2399_v46, %v4706_v40  ;;  %v2402_v19 = vmul.f32 2.0, %v3536_v39  ;;  %v2305_v25 = vadd.f32 %v3318_v34, %v4759_v15  ;;  %v2296_v31 = vpop.f32.mrb[81].mxu1 }
 0x68d   :  { %v2756_v59 = vsel %vm2745_vm3, %v2723_v37, 0.0  ;;  %v2721_v20 = vsel %vm2712_vm2, %v2688_v6, %v4726_v43  ;;  %v2400_v29 = vmul.f32 2.0, %v3538_v56  ;;  %v2297_v47 = vadd.f32 %v4759_v15, %v2296_v31  ;;  %v3319_v36 = vpop.f32.mrb[82].mxu1  ;;  %v4880_v6 = vpop.permute.xlu1 %2629 }
 0x68e   :  { %2788 = vst [vmem:[#allocation16 + $0x50] sm:$0xff] %v2756_v59  ;;  %v2754_v61 = vsel %vm2745_vm3, %v2721_v20, 0.0  ;;  %v2691_v40 = vsel %vm2679_vm1, %v2402_v19, %v4716_v3  ;;  %3547 = vtanh.f32 %v2305_v25  ;;  %v2308_v26 = vadd.f32 %v3319_v36, %v4759_v15  ;;  %v2299_v9 = vpop.f32.mrb[83].mxu1  ;;  %v4894_v36 = vpop.permute.xlu0 %2511 }
 0x68f   :  { %2786 = vst [vmem:[#allocation16 + $0x40] sm:$0xff] %v2754_v61  ;;  %v2724_v38 = vsel %vm2712_vm2, %v2691_v40, %v4736_v62  ;;  %v2689_v43 = vsel %vm2679_vm1, %v2400_v29, %v4708_v58  ;;  %3549 = vtanh.f32 %v2297_v47  ;;  %v2300_v63 = vadd.f32 %v4759_v15, %v2299_v9 }
 0x690   :  { %v3540_v57 = vpop.eup %3539  ;;  %v2757_v16 = vsel %vm2745_vm3, %v2724_v38, 0.0  ;;  %v2722_v3 = vsel %vm2712_vm2, %v2689_v43, %v4728_v44  ;;  %3551 = vtanh.f32 %v2308_v26 }
 0x691   :  { %v3542_v28 = vpop.eup %3541  ;;  %2789 = vst [vmem:[#allocation16 + $0x58] sm:$0xff] %v2757_v16  ;;  %v2755_v23 = vsel %vm2745_vm3, %v2722_v3, 0.0  ;;  %v2405_v62 = vmul.f32 2.0, %v3540_v57  ;;  %3553 = vtanh.f32 %v2300_v63  ;;  %v4899_v63 = vpop.permute.xlu1 %2513 }
 0x692   :  { %2787 = vst [vmem:[#allocation16 + $0x48] sm:$0xff] %v2755_v23  ;;  %v2403_v58 = vmul.f32 2.0, %v3542_v28 }
 0x693   :  { %v3544_v17 = vpop.eup %3543  ;;  %v2694_v49 = vsel %vm2679_vm1, %v2405_v62, %v4730_v54  ;;  %v3322_v60 = vpop.f32.mrb[84].mxu1 }
 0x694   :  { %v3546_v0 = vpop.eup %3545  ;;  %v2727_v44 = vsel %vm2712_vm2, %v2694_v49, %v4750_v11  ;;  %v2692_v27 = vsel %vm2679_vm1, %v2403_v58, %v4722_v1  ;;  %v2406_v8 = vmul.f32 2.0, %v3544_v17  ;;  %v2321_v46 = vadd.f32 %v3322_v60, %v4759_v15  ;;  %v2312_v39 = vpop.f32.mrb[85].mxu1 }
 0x695   :  { %v2760_v2 = vsel %vm2745_vm3, %v2727_v44, 0.0  ;;  %v2725_v34 = vsel %vm2712_vm2, %v2692_v27, %v4742_v33  ;;  %v2404_v56 = vmul.f32 2.0, %v3546_v0  ;;  %v2313_v54 = vadd.f32 %v4759_v15, %v2312_v39  ;;  %v3323_v37 = vpop.f32.mrb[86].mxu1  ;;  %v4917_v0 = vpop.permute.xlu0 %2631 }
 0x696   :  { %2792 = vst [vmem:[#allocation16 + $0x70] sm:$0xff] %v2760_v2  ;;  %v2758_v11 = vsel %vm2745_vm3, %v2725_v34, 0.0  ;;  %v2695_v1 = vsel %vm2679_vm1, %v2406_v8, %v4732_v55  ;;  %3555 = vtanh.f32 %v2321_v46  ;;  %v2324_v19 = vadd.f32 %v3323_v37, %v4759_v15  ;;  %v2315_v25 = vpop.f32.mrb[87].mxu1  ;;  %v2634_v2 = vpop.permute.xlu1 %2633 }
 0x697   :  { %2790 = vst [vmem:[#allocation16 + $0x60] sm:$0xff] %v2758_v11  ;;  %v2728_v33 = vsel %vm2712_vm2, %v2695_v1, %v4752_v13  ;;  %v2693_v31 = vsel %vm2679_vm1, %v2404_v56, %v4724_v7  ;;  %3557 = vtanh.f32 %v2313_v54  ;;  %v2316_v59 = vadd.f32 %v4759_v15, %v2315_v25 }
 0x698   :  { %v3548_v20 = vpop.eup %3547  ;;  %v2761_v29 = vsel %vm2745_vm3, %v2728_v33, 0.0  ;;  %v2726_v55 = vsel %vm2712_vm2, %v2693_v31, %v4744_v41  ;;  %3559 = vtanh.f32 %v2324_v19 }
 0x699   :  { %v3550_v47 = vpop.eup %3549  ;;  %2793 = vst [vmem:[#allocation16 + $0x78] sm:$0xff] %v2761_v29  ;;  %v2759_v61 = vsel %vm2745_vm3, %v2726_v55, 0.0  ;;  %v2409_v13 = vmul.f32 2.0, %v3548_v20  ;;  %3561 = vtanh.f32 %v2316_v59  ;;  %v2516_v31 = vpop.permute.xlu0 %2515 }
 0x69a   :  { %v3552_v40 = vpop.eup %3551  ;;  %2791 = vst [vmem:[#allocation16 + $0x68] sm:$0xff] %v2759_v61  ;;  %v2407_v7 = vmul.f32 2.0, %v3550_v47 }
 0x69b   :  { %v3554_v26 = vpop.eup %3553  ;;  %v2698_v9 = vsel %vm2679_vm1, %v2409_v13, %v4746_v45  ;;  %v2410_v38 = vmul.f32 2.0, %v3552_v40  ;;  %v3326_v43 = vpop.f32.mrb[88].mxu1 }
 0x69c   :  { %v2731_v41 = vsel %vm2712_vm2, %v2698_v9, %v4779_v51  ;;  %v2696_v57 = vsel %vm2679_vm1, %v2407_v7, %v4738_v4  ;;  %v2408_v16 = vmul.f32 2.0, %v3554_v26  ;;  %v2337_v3 = vadd.f32 %v3326_v43, %v4759_v15  ;;  %v2328_v28 = vpop.f32.mrb[89].mxu1  ;;  %v2518_v7 = vpop.permute.xlu1 %2517 }
 0x69d   :  { %v2764_v23 = vsel %vm2745_vm3, %v2731_v41, 0.0  ;;  %v2729_v62 = vsel %vm2712_vm2, %v2696_v57, %v4766_v35  ;;  %v2699_v45 = vsel %vm2679_vm1, %v2410_v38, %v4748_v10  ;;  %v2329_v58 = vadd.f32 %v4759_v15, %v2328_v28  ;;  %v3327_v17 = vpop.f32.mrb[90].mxu1  ;;  %v2636_v41 = vpop.permute.xlu0 %2635 }
 0x69e   :  { %2796 = vst [vmem:[#allocation16 + $0x90] sm:$0xff] %v2764_v23  ;;  %v2762_v51 = vsel %vm2745_vm3, %v2729_v62, 0.0  ;;  %v2732_v4 = vsel %vm2712_vm2, %v2699_v45, %v4794_v30  ;;  %v2697_v49 = vsel %vm2679_vm1, %v2408_v16, %v4740_v12  ;;  %3563 = vtanh.f32 %v2337_v3  ;;  %v2331_v60 = vpop.f32.mrb[91].mxu1 }
 0x69f   :  { %2794 = vst [vmem:[#allocation16 + $0x80] sm:$0xff] %v2762_v51  ;;  %v2765_v35 = vsel %vm2745_vm3, %v2732_v4, 0.0  ;;  %v2730_v10 = vsel %vm2712_vm2, %v2697_v49, %v4769_v21  ;;  %3565 = vtanh.f32 %v2329_v58  ;;  %v2340_v44 = vadd.f32 %v3327_v17, %v4759_v15 }
 0x6a0   :  { %v3556_v27 = vpop.eup %3555  ;;  %2797 = vst [vmem:[#allocation16 + $0x98] sm:$0xff] %v2765_v35  ;;  %v2763_v30 = vsel %vm2745_vm3, %v2730_v10, 0.0  ;;  %v2332_v8 = vadd.f32 %v4759_v15, %v2331_v60  ;;  %v2638_v45 = vpop.permute.xlu1 %2637 }
 0x6a1   :  { %v3558_v12 = vpop.eup %3557  ;;  %2795 = vst [vmem:[#allocation16 + $0x88] sm:$0xff] %v2763_v30  ;;  %v2413_v46 = vmul.f32 2.0, %v3556_v27  ;;  %3567 = vtanh.f32 %v2340_v44  ;;  %v2640_v17 = vpop.permute.xlu0 %2639 }
 0x6a2   :  { %v3560_v39 = vpop.eup %3559  ;;  %v2411_v34 = vmul.f32 2.0, %v3558_v12  ;;  %3569 = vtanh.f32 %v2332_v8 }
 0x6a3   :  { %v3562_v56 = vpop.eup %3561  ;;  %v2702_v21 = vsel %vm2679_vm1, %v2413_v46, %v4772_v22  ;;  %v2414_v54 = vmul.f32 2.0, %v3560_v39  ;;  %v3330_v37 = vpop.f32.mrb[92].mxu1 }
 0x6a4   :  { %v2735_v11 = vsel %vm2712_vm2, %v2702_v21, %v4867_v53  ;;  %v2700_v1 = vsel %vm2679_vm1, %v2411_v34, %v4754_v14  ;;  %v2412_v19 = vmul.f32 2.0, %v3562_v56  ;;  %v2353_v25 = vadd.f32 %v3330_v37, %v4759_v15  ;;  %v2344_v33 = vpop.f32.mrb[93].mxu1  ;;  %v2642_v44 = vpop.permute.xlu1 %2641 }
 0x6a5   :  { %v2768_v59 = vsel %vm2745_vm3, %v2735_v11, 0.0  ;;  %v2733_v20 = vsel %vm2712_vm2, %v2700_v1, %v4829_v42  ;;  %v2703_v22 = vsel %vm2679_vm1, %v2414_v54, %v4777_v24  ;;  %v2345_v29 = vadd.f32 %v4759_v15, %v2344_v33  ;;  %v3331_v55 = vpop.f32.mrb[94].mxu1  ;;  %v2644_v30 = vpop.permute.xlu0 %2643 }
 0x6a6   :  { %2800 = vst [vmem:[#allocation16 + $0xb0] sm:$0xff] %v2768_v59  ;;  %v2766_v53 = vsel %vm2745_vm3, %v2733_v20, 0.0  ;;  %v2736_v14 = vsel %vm2712_vm2, %v2703_v22, %v4880_v6  ;;  %v2701_v47 = vsel %vm2679_vm1, %v2412_v19, %v4761_v48  ;;  %3571 = vtanh.f32 %v2353_v25  ;;  %v2347_v61 = vpop.f32.mrb[95].mxu1 }
 0x6a7   :  { %2798 = vst [vmem:[#allocation16 + $0xa0] sm:$0xff] %v2766_v53  ;;  %v2769_v42 = vsel %vm2745_vm3, %v2736_v14, 0.0  ;;  %v2734_v24 = vsel %vm2712_vm2, %v2701_v47, %v4837_v5  ;;  %3573 = vtanh.f32 %v2345_v29  ;;  %v2356_v13 = vadd.f32 %v3331_v55, %v4759_v15 }
 0x6a8   :  { %v3564_v40 = vpop.eup %3563  ;;  %2801 = vst [vmem:[#allocation16 + $0xb8] sm:$0xff] %v2769_v42  ;;  %v2767_v26 = vsel %vm2745_vm3, %v2734_v24, 0.0  ;;  %v2348_v6 = vadd.f32 %v4759_v15, %v2347_v61  ;;  %v2646_v21 = vpop.permute.xlu1 %2645 }
 0x6a9   :  { %v3566_v9 = vpop.eup %3565  ;;  %2799 = vst [vmem:[#allocation16 + $0xa8] sm:$0xff] %v2767_v26  ;;  %v2417_v48 = vmul.f32 2.0, %v3564_v40  ;;  %3575 = vtanh.f32 %v2356_v13 }
 0x6aa   :  { %v2415_v38 = vmul.f32 2.0, %v3566_v9  ;;  %3577 = vtanh.f32 %v2348_v6 }
 0x6ab   :  { %v3568_v43 = vpop.eup %3567  ;;  %v2706_v5 = vsel %vm2679_vm1, %v2417_v48, %v4846_v18 }
 0x6ac   :  { %v3570_v57 = vpop.eup %3569  ;;  %v2739_v16 = vsel %vm2712_vm2, %v2706_v5, %v2636_v41  ;;  %v2704_v3 = vsel %vm2679_vm1, %v2415_v38, %v4807_v32  ;;  %v2418_v28 = vmul.f32 2.0, %v3568_v43 }
 0x6ad   :  { %v2772_v15 = vsel %vm2745_vm3, %v2739_v16, 0.0  ;;  %v2737_v23 = vsel %vm2712_vm2, %v2704_v3, %v4917_v0  ;;  %v2416_v62 = vmul.f32 2.0, %v3570_v57 }
 0x6ae   :  { %2804 = vst [vmem:[#allocation16 + $0xd0] sm:$0xff] %v2772_v15  ;;  %v2770_v58 = vsel %vm2745_vm3, %v2737_v23, 0.0  ;;  %v2707_v18 = vsel %vm2679_vm1, %v2418_v28, %v4861_v50 }
 0x6af   :  { %2802 = vst [vmem:[#allocation16 + $0xc0] sm:$0xff] %v2770_v58  ;;  %v2740_v51 = vsel %vm2712_vm2, %v2707_v18, %v2638_v45  ;;  %v2705_v32 = vsel %vm2679_vm1, %v2416_v62, %v4811_v52 }
 0x6b0   :  { %v3572_v4 = vpop.eup %3571  ;;  %v2773_v49 = vsel %vm2745_vm3, %v2740_v51, 0.0  ;;  %v2738_v60 = vsel %vm2712_vm2, %v2705_v32, %v2634_v2 }
 0x6b1   :  { %v3574_v0 = vpop.eup %3573  ;;  %2805 = vst [vmem:[#allocation16 + $0xd8] sm:$0xff] %v2773_v49  ;;  %v2771_v35 = vsel %vm2745_vm3, %v2738_v60, 0.0  ;;  %v2421_v10 = vmul.f32 2.0, %v3572_v4 }
 0x6b2   :  { %2803 = vst [vmem:[#allocation16 + $0xc8] sm:$0xff] %v2771_v35  ;;  %v2419_v50 = vmul.f32 2.0, %v3574_v0 }
 0x6b3   :  { %v3576_v27 = vpop.eup %3575  ;;  %v2710_v8 = vsel %vm2679_vm1, %v2421_v10, %v2516_v31 }
 0x6b4   :  { %v3578_v12 = vpop.eup %3577  ;;  %v2743_v52 = vsel %vm2712_vm2, %v2710_v8, %v2644_v30  ;;  %v2708_v46 = vsel %vm2679_vm1, %v2419_v50, %v4894_v36  ;;  %v2422_v39 = vmul.f32 2.0, %v3576_v27 }
 0x6b5   :  { %v2776_v2 = vsel %vm2745_vm3, %v2743_v52, 0.0  ;;  %v2741_v34 = vsel %vm2712_vm2, %v2708_v46, %v2640_v17  ;;  %v2420_v56 = vmul.f32 2.0, %v3578_v12 }
 0x6b6   :  { %2808 = vst [vmem:[#allocation16 + $0xf0] sm:$0xff] %v2776_v2  ;;  %v2774_v54 = vsel %vm2745_vm3, %v2741_v34, 0.0  ;;  %v2711_v37 = vsel %vm2679_vm1, %v2422_v39, %v2518_v7 }
 0x6b7   :  { %2806 = vst [vmem:[#allocation16 + $0xe0] sm:$0xff] %v2774_v54  ;;  %v2744_v11 = vsel %vm2712_vm2, %v2711_v37, %v2646_v21  ;;  %v2709_v36 = vsel %vm2679_vm1, %v2420_v56, %v4899_v63 }
 0x6b8   :  { %v2777_v1 = vsel %vm2745_vm3, %v2744_v11, 0.0  ;;  %v2742_v19 = vsel %vm2712_vm2, %v2709_v36, %v2642_v44 }
 0x6b9   :  { %2809 = vst [vmem:[#allocation16 + $0xf8] sm:$0xff] %v2777_v1  ;;  %v2775_v25 = vsel %vm2745_vm3, %v2742_v19, 0.0 }
 0x6ba   :  { %2807 = vst [vmem:[#allocation16 + $0xe8] sm:$0xff] %v2775_v25 }
 0x6bb   :  { %3782 = shalt.err (!%p3779_p12)
}
 0x6bc   :  { %s3783_s17 = scalar_lea.hbm %s5009_s14, 4096 }
 0x6bd   :  { %p3784_p13 = scmp.ne.s32.totalorder %s5009_s14, %s3783_s17  ;;  %p3787_p0 = scmp.lt.u32.totalorder %s3783_s17, %s5009_s14 }
 0x6bf   :  { %p3789_p1 = pnand %p3787_p0, %p3784_p13 }
 0x6c1   :  { %3792 = shalt.err (!%p3789_p1)
}
 0x6c2   :  { %2821 = dma.vmem_to_hbm [thread:$0]  %s2816_s7, 4096, %s5009_s14, [#allocation4], %s3810_s30, %s3810_s30, %s3811_s25  }
 0x6c3   :  { %3803 = dma.done.wait [#allocation4], 4096  }
 0x6c4   :  { %3804 = vsyncadd [#allocation4], 4294963200 }
 0x6c5   :  { %2825 = vsyncpa [#allocation3], 1 }
 0x6c6   :  { %2826 = vsyncpa [#allocation6], 1 }
 0x6c7   :  { %2827 = vsyncpa [#allocation9], 1 }
 0x6c8   :  { %2828 = vsyncpa [#allocation12], 1 }
 0x6c9   :  { %2829 = vsyncpa [#allocation15], 1 }
 0x6ca   :  { %2830 = vsyncpa [#allocation4], 1 }

</bundles_post_ra>
